<compile_context>
chip_gen: v5e
topology: v5e:2x2
jax: 0.10.0
libtpu: 0.0.40
codegen_flags: <defaults>
</compile_context>

<pallas_src>
import functools
import math

import jax
import jax.numpy as jnp
from jax.experimental import pallas as pl
from jax.experimental.pallas import tpu as pltpu


# --------------------------------------------------------------------------- #
# Eval-mode BN folding:  BN(Wx + b) = (scale*W) x + (beta + (b - mean)*scale)
# --------------------------------------------------------------------------- #
def _fold_params(params, matmul_dtype, eps):
    """Returns [(W' [out,in] matmul_dtype, shift [out] f32)] per layer.

    The BN scale is folded into W in f32 BEFORE the bf16 cast (single rounding).
    """
    folded = []
    *bn_layers, final = params
    for (W, b, gamma, beta, mean, var) in bn_layers:
        scale = gamma * jax.lax.rsqrt(var + eps)            # f32
        shift = beta + (b - mean) * scale                   # f32
        Wf = (W * scale[:, None]).astype(matmul_dtype)
        folded.append((Wf, shift.astype(jnp.float32)))
    W6, b6 = final
    folded.append((W6.astype(matmul_dtype), b6.astype(jnp.float32)))
    return folded


# --------------------------------------------------------------------------- #
# Kernel
# --------------------------------------------------------------------------- #
def _autoencoder_kernel(x_ref,
                        w1_ref, w2_ref, w3_ref, w4_ref, w5_ref, w6_ref,
                        shifts_ref,
                        latent_ref, out_ref,
                        *, out_dims, matmul_dtype, ew_dtype):
    """Activations live as [features, batch_tile] (batch on the lane axis)."""

    def shift(i, dtype):
        # Column i of the packed shift table, as an [out_i, 1] column vector.
        return shifts_ref[0:out_dims[i], i:i + 1].astype(dtype)

    def linear(h, w_ref, i, dtype):
        # y = W' @ h + shift   (bias + eval-mode BN already folded into W', shift)
        z = jnp.dot(w_ref[...], h.astype(matmul_dtype),
                    preferred_element_type=jnp.float32)
        return z.astype(dtype) + shift(i, dtype)

    h = x_ref[...]                                          # bf16 [d_in, tile]
    h = jnp.tanh(linear(h, w1_ref, 0, ew_dtype))            # layer1
    h = jnp.tanh(linear(h, w2_ref, 1, ew_dtype))            # layer2
    latent = linear(h, w3_ref, 2, jnp.float32)              # layer3 (no tanh)
    h = jnp.tanh(linear(latent, w4_ref, 3, ew_dtype))       # layer4
    h = jnp.tanh(linear(h, w5_ref, 4, ew_dtype))            # layer5
    out = linear(h, w6_ref, 5, jnp.float32)                 # layer6 (no BN/tanh)

    latent_ref[...] = latent.astype(latent_ref.dtype)
    out_ref[...] = out.astype(out_ref.dtype)


# --------------------------------------------------------------------------- #
# Wrapper
# --------------------------------------------------------------------------- #
def _bf16_elementwise_ok():
    """bf16 VPU/EUP exists on v6e/v7x; keep elementwise math f32 on v2-v5."""
    try:
        kind = jax.devices()[0].device_kind.lower()
    except Exception:
        return False
    return not any(tag in kind for tag in ("v2", "v3", "v4", "v5"))


def _choose_tile(batch, max_tile):
    """Largest reasonable lane tile (multiple of 128), but keep >=2 grid steps
    when possible so ("parallel",) can shard across the two v7x TensorCores."""
    b128 = pl.cdiv(batch, 128) * 128
    if b128 <= 128:
        return 128
    if b128 <= 2 * max_tile:
        return pl.cdiv(b128, 2 * 128) * 128     # two grid steps
    return max_tile


@functools.partial(jax.jit,
                   static_argnames=("max_batch_tile", "use_bf16",
                                    "elementwise_bf16", "eps"))
def mask_gene_encoder_decoder_bn_tanh_2layer(x, params, *,
                                             max_batch_tile=2048,
                                             use_bf16=True,
                                             elementwise_bf16=None,
                                             eps=1e-5):
    """Forward pass of MaskGeneEncoderDecoderBNTanh2Layer (eval-mode BN).

    Args:
      x: [batch, in_features] f32.
      params: tuple of 6 per-layer tuples in PyTorch layout:
        layers 0..4: (W[out,in], b[out], gamma[out], beta[out],
                      running_mean[out], running_var[out])
        layer 5:     (W[out,in], b[out])
    Returns:
      (layer3 [batch, latent_dim], layer6 [batch, out_dim]) as f32.
    """
    B, d_in = x.shape
    matmul_dtype = jnp.bfloat16 if use_bf16 else jnp.float32
    if elementwise_bf16 is None:
        elementwise_bf16 = use_bf16 and _bf16_elementwise_ok()
    ew_dtype = jnp.bfloat16 if (use_bf16 and elementwise_bf16) else jnp.float32

    folded = _fold_params(params, matmul_dtype, eps)
    out_dims = tuple(int(W.shape[0]) for W, _ in folded)
    in_dims = tuple(int(W.shape[1]) for W, _ in folded)
    latent_dim, out_dim = out_dims[2], out_dims[5]
    weights = [W for W, _ in folded]

    # Pack all 6 shift vectors into one small [max_out, 8] table (col i = layer i).
    max_out = max(out_dims)
    shifts = jnp.zeros((max_out, 8), jnp.float32)
    for i, (_, s) in enumerate(folded):
        shifts = shifts.at[:s.shape[0], i].set(s)

    # Batch on the lane axis; input fed as bf16 (halves input HBM traffic).
    tile = _choose_tile(B, max_batch_tile)
    b_pad = pl.cdiv(B, tile) * tile
    x_t = jnp.zeros((d_in, b_pad), matmul_dtype).at[:, :B].set(
        x.T.astype(matmul_dtype))

    grid = (b_pad // tile,)
    x_spec = pl.BlockSpec((d_in, tile), lambda i: (0, i))
    const_specs = [pl.BlockSpec(w.shape, lambda i: (0, 0)) for w in weights]
    const_specs.append(pl.BlockSpec(shifts.shape, lambda i: (0, 0)))
    out_specs = (
        pl.BlockSpec((latent_dim, tile), lambda i: (0, i)),
        pl.BlockSpec((out_dim, tile), lambda i: (0, i)),
    )
    out_shape = (
        jax.ShapeDtypeStruct((latent_dim, b_pad), jnp.float32),
        jax.ShapeDtypeStruct((out_dim, b_pad), jnp.float32),
    )

    # Scheduler hint.
    flops = (2 * b_pad * sum(fi * fo for fi, fo in zip(in_dims, out_dims))
             + b_pad * sum(out_dims))
    transcendentals = b_pad * (out_dims[0] + out_dims[1]
                               + out_dims[3] + out_dims[4])
    bytes_accessed = (x_t.size * x_t.dtype.itemsize
                      + (latent_dim + out_dim) * b_pad * 4
                      + sum(w.size * w.dtype.itemsize for w in weights)
                      + shifts.size * 4)

    latent_t, out_t = pl.pallas_call(
        functools.partial(_autoencoder_kernel,
                          out_dims=out_dims,
                          matmul_dtype=matmul_dtype,
                          ew_dtype=ew_dtype),
        out_shape=out_shape,
        grid_spec=pltpu.PrefetchScalarGridSpec(
            num_scalar_prefetch=0,
            grid=grid,
            in_specs=[x_spec] + const_specs,
            out_specs=out_specs,
        ),
        compiler_params=pltpu.CompilerParams(
            dimension_semantics=("parallel",)),
        cost_estimate=pl.CostEstimate(
            flops=int(flops),
            transcendentals=int(transcendentals),
            bytes_accessed=int(bytes_accessed)),
    )(x_t, *weights, shifts)

    return latent_t[:, :B].T, out_t[:, :B].T


# --------------------------------------------------------------------------- #
# Deterministic parameter init (nn.Linear / nn.BatchNorm1d-style, PyTorch layout)
# --------------------------------------------------------------------------- #
def init_params(key, in_dims, out_dims):
    params = []
    n = len(in_dims)
    keys = jax.random.split(key, 6 * n)
    for idx, (fin, fout) in enumerate(zip(in_dims, out_dims)):
        kw, kb, kg, kbe, km, kv = keys[6 * idx:6 * idx + 6]
        bound = 1.0 / math.sqrt(fin)
        W = jax.random.uniform(kw, (fout, fin), minval=-bound, maxval=bound,
                               dtype=jnp.float32)
        b = jax.random.uniform(kb, (fout,), minval=-bound, maxval=bound,
                               dtype=jnp.float32)
        if idx < n - 1:   # every linear except the last is followed by BatchNorm1d
            gamma = jax.random.uniform(kg, (fout,), minval=0.5, maxval=1.5,
                                       dtype=jnp.float32)
            beta = 0.1 * jax.random.normal(kbe, (fout,), dtype=jnp.float32)
            mean = 0.1 * jax.random.normal(km, (fout,), dtype=jnp.float32)
            var = jax.random.uniform(kv, (fout,), minval=0.5, maxval=1.5,
                                     dtype=jnp.float32)
            params.append((W, b, gamma, beta, mean, var))
        else:
            params.append((W, b))
    return tuple(params)


def reference_forward(x, params, *, use_bf16=True, elementwise_bf16=None,
                      eps=1e-5):
    """Pure-JAX eval-mode reference mirroring the kernel's dtype path."""
    matmul_dtype = jnp.bfloat16 if use_bf16 else jnp.float32
    if elementwise_bf16 is None:
        elementwise_bf16 = use_bf16 and _bf16_elementwise_ok()
    ew_dtype = jnp.bfloat16 if (use_bf16 and elementwise_bf16) else jnp.float32
    folded = _fold_params(params, matmul_dtype, eps)

    def linear(h, i, dtype):
        W, s = folded[i]
        z = jnp.dot(W, h.astype(matmul_dtype),
                    preferred_element_type=jnp.float32)
        return z.astype(dtype) + s[:, None].astype(dtype)

    h = x.T.astype(matmul_dtype)
    h = jnp.tanh(linear(h, 0, ew_dtype))
    h = jnp.tanh(linear(h, 1, ew_dtype))
    latent = linear(h, 2, jnp.float32)
    h = jnp.tanh(linear(latent, 3, ew_dtype))
    h = jnp.tanh(linear(h, 4, ew_dtype))
    out = linear(h, 5, jnp.float32)
    return latent.T.astype(jnp.float32), out.T.astype(jnp.float32)


if __name__ == "__main__":
    # Layer chain of the "2Layer" variant (3 encoder + 3 decoder linears):
    #   enc1 32->64 (BN,tanh), enc2 64->48 (BN,tanh), enc3 48->32 (BN) -> layer3
    #   dec1 32->48 (BN,tanh), dec2 48->64 (BN,tanh), dec3 64->32      -> layer6
    in_dims = [32, 64, 48, 32, 48, 64]
    out_dims = [64, 48, 32, 48, 64, 32]

    key = jax.random.PRNGKey(0)
    k_x, k_p = jax.random.split(key)
    params = init_params(k_p, in_dims, out_dims)

    batch = 512
    x = jax.random.normal(k_x, (batch, in_dims[0]), dtype=jnp.float32)

    latent, recon = mask_gene_encoder_decoder_bn_tanh_2layer(x, params)
    latent, recon = jax.block_until_ready((latent, recon))

    ref_latent, ref_recon = reference_forward(x, params)
    assert latent.shape == (batch, out_dims[2])
    assert recon.shape == (batch, out_dims[5])
    assert jnp.allclose(latent, ref_latent, atol=3e-2, rtol=3e-2), (
        float(jnp.max(jnp.abs(latent - ref_latent))))
    assert jnp.allclose(recon, ref_recon, atol=3e-2, rtol=3e-2), (
        float(jnp.max(jnp.abs(recon - ref_recon))))

    print("KERNEL_OK")
</pallas_src>

<mosaic_0001>
module attributes {stable_mosaic.version = 11 : i64} {
  func.func @_autoencoder_kernel(%arg0: i32, %arg1: memref<32x256xbf16, #tpu.memory_space<vmem>>, %arg2: memref<64x32xbf16, #tpu.memory_space<vmem>>, %arg3: memref<48x64xbf16, #tpu.memory_space<vmem>>, %arg4: memref<32x48xbf16, #tpu.memory_space<vmem>>, %arg5: memref<48x32xbf16, #tpu.memory_space<vmem>>, %arg6: memref<64x48xbf16, #tpu.memory_space<vmem>>, %arg7: memref<32x64xbf16, #tpu.memory_space<vmem>>, %arg8: memref<64x8xf32, #tpu.memory_space<vmem>>, %arg9: memref<32x256xf32, #tpu.memory_space<vmem>>, %arg10: memref<32x256xf32, #tpu.memory_space<vmem>>) attributes {dimension_semantics = [#tpu.dimension_semantics<parallel>], iteration_bounds = array<i64: 2>, scalar_prefetch = 0 : i64, scratch_operands = 0 : i64, tpu.core_type = #tpu.core_type<tc>, window_params = [{transform_indices = @transform_0, window_bounds = array<i64: 32, 256>}, {pipeline_mode = #tpu.pipeline_mode<synchronous>, transform_indices = @transform_1, window_bounds = array<i64: 64, 32>}, {pipeline_mode = #tpu.pipeline_mode<synchronous>, transform_indices = @transform_2, window_bounds = array<i64: 48, 64>}, {pipeline_mode = #tpu.pipeline_mode<synchronous>, transform_indices = @transform_3, window_bounds = array<i64: 32, 48>}, {pipeline_mode = #tpu.pipeline_mode<synchronous>, transform_indices = @transform_4, window_bounds = array<i64: 48, 32>}, {pipeline_mode = #tpu.pipeline_mode<synchronous>, transform_indices = @transform_5, window_bounds = array<i64: 64, 48>}, {pipeline_mode = #tpu.pipeline_mode<synchronous>, transform_indices = @transform_6, window_bounds = array<i64: 32, 64>}, {pipeline_mode = #tpu.pipeline_mode<synchronous>, transform_indices = @transform_7, window_bounds = array<i64: 64, 8>}, {transform_indices = @transform_8, window_bounds = array<i64: 32, 256>}, {transform_indices = @transform_9, window_bounds = array<i64: 32, 256>}]} {
    %c0 = arith.constant 0 : index
    %c0_0 = arith.constant 0 : index
    %0 = vector.load %arg1[%c0, %c0_0] : memref<32x256xbf16, #tpu.memory_space<vmem>>, vector<32x256xbf16>
    %c0_1 = arith.constant 0 : index
    %c0_2 = arith.constant 0 : index
    %1 = vector.load %arg2[%c0_1, %c0_2] : memref<64x32xbf16, #tpu.memory_space<vmem>>, vector<64x32xbf16>
    %cst = arith.constant dense<0.000000e+00> : vector<64x256xf32>
    %2 = tpu.matmul %1, %0, %cst {dimension_numbers = #tpu.dot_dimension_numbers<[1], [0], [0], [1], [0, 0, 1, 1], [], []>} : vector<64x32xbf16>, vector<32x256xbf16>, vector<64x256xf32> -> vector<64x256xf32>
    %3 = arith.truncf %2 : vector<64x256xf32> to vector<64x256xbf16>
    %c0_3 = arith.constant 0 : index
    %c0_4 = arith.constant 0 : index
    %4 = vector.load %arg8[%c0_3, %c0_4] : memref<64x8xf32, #tpu.memory_space<vmem>>, vector<64x1xf32>
    %5 = arith.truncf %4 : vector<64x1xf32> to vector<64x1xbf16>
    %6 = vector.broadcast %5 : vector<64x1xbf16> to vector<64x256xbf16>
    %7 = arith.addf %3, %6 : vector<64x256xbf16>
    %8 = math.tanh %7 : vector<64x256xbf16>
    %c0_5 = arith.constant 0 : index
    %c0_6 = arith.constant 0 : index
    %9 = vector.load %arg3[%c0_5, %c0_6] : memref<48x64xbf16, #tpu.memory_space<vmem>>, vector<48x64xbf16>
    %cst_7 = arith.constant dense<0.000000e+00> : vector<48x256xf32>
    %10 = tpu.matmul %9, %8, %cst_7 {dimension_numbers = #tpu.dot_dimension_numbers<[1], [0], [0], [1], [0, 0, 1, 1], [], []>} : vector<48x64xbf16>, vector<64x256xbf16>, vector<48x256xf32> -> vector<48x256xf32>
    %11 = arith.truncf %10 : vector<48x256xf32> to vector<48x256xbf16>
    %c0_8 = arith.constant 0 : index
    %c1 = arith.constant 1 : index
    %12 = vector.load %arg8[%c0_8, %c1] : memref<64x8xf32, #tpu.memory_space<vmem>>, vector<48x1xf32>
    %13 = arith.truncf %12 : vector<48x1xf32> to vector<48x1xbf16>
    %14 = vector.broadcast %13 : vector<48x1xbf16> to vector<48x256xbf16>
    %15 = arith.addf %11, %14 : vector<48x256xbf16>
    %16 = math.tanh %15 : vector<48x256xbf16>
    %c0_9 = arith.constant 0 : index
    %c0_10 = arith.constant 0 : index
    %17 = vector.load %arg4[%c0_9, %c0_10] : memref<32x48xbf16, #tpu.memory_space<vmem>>, vector<32x48xbf16>
    %cst_11 = arith.constant dense<0.000000e+00> : vector<32x256xf32>
    %18 = tpu.matmul %17, %16, %cst_11 {dimension_numbers = #tpu.dot_dimension_numbers<[1], [0], [0], [1], [0, 0, 1, 1], [], []>} : vector<32x48xbf16>, vector<48x256xbf16>, vector<32x256xf32> -> vector<32x256xf32>
    %c0_12 = arith.constant 0 : index
    %c2 = arith.constant 2 : index
    %19 = vector.load %arg8[%c0_12, %c2] : memref<64x8xf32, #tpu.memory_space<vmem>>, vector<32x1xf32>
    %20 = vector.broadcast %19 : vector<32x1xf32> to vector<32x256xf32>
    %21 = arith.addf %18, %20 : vector<32x256xf32>
    %c0_13 = arith.constant 0 : index
    %c0_14 = arith.constant 0 : index
    %22 = vector.load %arg5[%c0_13, %c0_14] : memref<48x32xbf16, #tpu.memory_space<vmem>>, vector<48x32xbf16>
    %23 = arith.truncf %21 : vector<32x256xf32> to vector<32x256xbf16>
    %cst_15 = arith.constant dense<0.000000e+00> : vector<48x256xf32>
    %24 = tpu.matmul %22, %23, %cst_15 {dimension_numbers = #tpu.dot_dimension_numbers<[1], [0], [0], [1], [0, 0, 1, 1], [], []>} : vector<48x32xbf16>, vector<32x256xbf16>, vector<48x256xf32> -> vector<48x256xf32>
    %25 = arith.truncf %24 : vector<48x256xf32> to vector<48x256xbf16>
    %c0_16 = arith.constant 0 : index
    %c3 = arith.constant 3 : index
    %26 = vector.load %arg8[%c0_16, %c3] : memref<64x8xf32, #tpu.memory_space<vmem>>, vector<48x1xf32>
    %27 = arith.truncf %26 : vector<48x1xf32> to vector<48x1xbf16>
    %28 = vector.broadcast %27 : vector<48x1xbf16> to vector<48x256xbf16>
    %29 = arith.addf %25, %28 : vector<48x256xbf16>
    %30 = math.tanh %29 : vector<48x256xbf16>
    %c0_17 = arith.constant 0 : index
    %c0_18 = arith.constant 0 : index
    %31 = vector.load %arg6[%c0_17, %c0_18] : memref<64x48xbf16, #tpu.memory_space<vmem>>, vector<64x48xbf16>
    %cst_19 = arith.constant dense<0.000000e+00> : vector<64x256xf32>
    %32 = tpu.matmul %31, %30, %cst_19 {dimension_numbers = #tpu.dot_dimension_numbers<[1], [0], [0], [1], [0, 0, 1, 1], [], []>} : vector<64x48xbf16>, vector<48x256xbf16>, vector<64x256xf32> -> vector<64x256xf32>
    %33 = arith.truncf %32 : vector<64x256xf32> to vector<64x256xbf16>
    %c0_20 = arith.constant 0 : index
    %c4 = arith.constant 4 : index
    %34 = vector.load %arg8[%c0_20, %c4] : memref<64x8xf32, #tpu.memory_space<vmem>>, vector<64x1xf32>
    %35 = arith.truncf %34 : vector<64x1xf32> to vector<64x1xbf16>
    %36 = vector.broadcast %35 : vector<64x1xbf16> to vector<64x256xbf16>
    %37 = arith.addf %33, %36 : vector<64x256xbf16>
    %38 = math.tanh %37 : vector<64x256xbf16>
    %c0_21 = arith.constant 0 : index
    %c0_22 = arith.constant 0 : index
    %39 = vector.load %arg7[%c0_21, %c0_22] : memref<32x64xbf16, #tpu.memory_space<vmem>>, vector<32x64xbf16>
    %cst_23 = arith.constant dense<0.000000e+00> : vector<32x256xf32>
    %40 = tpu.matmul %39, %38, %cst_23 {dimension_numbers = #tpu.dot_dimension_numbers<[1], [0], [0], [1], [0, 0, 1, 1], [], []>} : vector<32x64xbf16>, vector<64x256xbf16>, vector<32x256xf32> -> vector<32x256xf32>
    %c0_24 = arith.constant 0 : index
    %c5 = arith.constant 5 : index
    %41 = vector.load %arg8[%c0_24, %c5] : memref<64x8xf32, #tpu.memory_space<vmem>>, vector<32x1xf32>
    %42 = vector.broadcast %41 : vector<32x1xf32> to vector<32x256xf32>
    %43 = arith.addf %40, %42 : vector<32x256xf32>
    %c0_25 = arith.constant 0 : index
    %c0_26 = arith.constant 0 : index
    %44 = vector.load %arg9[%c0_25, %c0_26] : memref<32x256xf32, #tpu.memory_space<vmem>>, vector<32x256xf32>
    tpu.vector_store %arg9[%c0_25, %c0_26], %21 {strides = array<i32>} : memref<32x256xf32, #tpu.memory_space<vmem>>, vector<32x256xf32>,
    %c0_27 = arith.constant 0 : index
    %c0_28 = arith.constant 0 : index
    %45 = vector.load %arg10[%c0_27, %c0_28] : memref<32x256xf32, #tpu.memory_space<vmem>>, vector<32x256xf32>
    tpu.vector_store %arg10[%c0_27, %c0_28], %43 {strides = array<i32>} : memref<32x256xf32, #tpu.memory_space<vmem>>, vector<32x256xf32>,
    return
  }
  func.func @transform_0(%arg0: i32) -> (i32, i32) {
    %c0_i32 = arith.constant 0 : i32
    %c0_i32_0 = arith.constant 0 : i32
    return %c0_i32, %arg0 : i32, i32
  }
  func.func @transform_1(%arg0: i32) -> (i32, i32) {
    %c0_i32 = arith.constant 0 : i32
    %c0_i32_0 = arith.constant 0 : i32
    %c0_i32_1 = arith.constant 0 : i32
    return %c0_i32, %c0_i32_0 : i32, i32
  }
  func.func @transform_2(%arg0: i32) -> (i32, i32) {
    %c0_i32 = arith.constant 0 : i32
    %c0_i32_0 = arith.constant 0 : i32
    %c0_i32_1 = arith.constant 0 : i32
    return %c0_i32, %c0_i32_0 : i32, i32
  }
  func.func @transform_3(%arg0: i32) -> (i32, i32) {
    %c0_i32 = arith.constant 0 : i32
    %c0_i32_0 = arith.constant 0 : i32
    %c0_i32_1 = arith.constant 0 : i32
    return %c0_i32, %c0_i32_0 : i32, i32
  }
  func.func @transform_4(%arg0: i32) -> (i32, i32) {
    %c0_i32 = arith.constant 0 : i32
    %c0_i32_0 = arith.constant 0 : i32
    %c0_i32_1 = arith.constant 0 : i32
    return %c0_i32, %c0_i32_0 : i32, i32
  }
  func.func @transform_5(%arg0: i32) -> (i32, i32) {
    %c0_i32 = arith.constant 0 : i32
    %c0_i32_0 = arith.constant 0 : i32
    %c0_i32_1 = arith.constant 0 : i32
    return %c0_i32, %c0_i32_0 : i32, i32
  }
  func.func @transform_6(%arg0: i32) -> (i32, i32) {
    %c0_i32 = arith.constant 0 : i32
    %c0_i32_0 = arith.constant 0 : i32
    %c0_i32_1 = arith.constant 0 : i32
    return %c0_i32, %c0_i32_0 : i32, i32
  }
  func.func @transform_7(%arg0: i32) -> (i32, i32) {
    %c0_i32 = arith.constant 0 : i32
    %c0_i32_0 = arith.constant 0 : i32
    %c0_i32_1 = arith.constant 0 : i32
    return %c0_i32, %c0_i32_0 : i32, i32
  }
  func.func @transform_8(%arg0: i32) -> (i32, i32) {
    %c0_i32 = arith.constant 0 : i32
    %c0_i32_0 = arith.constant 0 : i32
    return %c0_i32, %arg0 : i32, i32
  }
  func.func @transform_9(%arg0: i32) -> (i32, i32) {
    %c0_i32 = arith.constant 0 : i32
    %c0_i32_0 = arith.constant 0 : i32
    return %c0_i32, %arg0 : i32, i32
  }
}

</mosaic_0001>

<bundles_post_ra>
// kernel: mask_gene_encoder_decoder_bn_tanh_2layer.1
= control target key start
LH: loop header
LB: loop body
LE: loop exit
PB: predicated region body
PF: predicated region fallthrough
CT: control target
= control target key end

     0   :  { %s2563_s0 = inlined_call_operand.vmem [shape: bf16[32,512], index: 0, kind: input, shape index: {}]   ;;  %s2564_s1 = inlined_call_operand.vmem [shape: bf16[64,32], index: 1, kind: input, shape index: {}]   ;;  %s2565_s2 = inlined_call_operand.vmem [shape: bf16[48,64], index: 2, kind: input, shape index: {}]   ;;  %s2566_s3 = inlined_call_operand.vmem [shape: bf16[32,48], index: 3, kind: input, shape index: {}]   ;;  %s2567_s4 = inlined_call_operand.vmem [shape: bf16[48,32], index: 4, kind: input, shape index: {}]   ;;  %s2568_s5 = inlined_call_operand.vmem [shape: bf16[64,48], index: 5, kind: input, shape index: {}]   ;;  %s2569_s6 = inlined_call_operand.vmem [shape: bf16[32,64], index: 6, kind: input, shape index: {}]   ;;  %s2570_s7 = inlined_call_operand.vmem [shape: f32[64,8], index: 7, kind: input, shape index: {}]   ;;  %s2571_s8 = inlined_call_operand.hbm [shape: f32[32,512], index: 8, kind: output, shape index: {0}]   ;;  %s2572_s9 = inlined_call_operand.hbm [shape: f32[32,512], index: 9, kind: output, shape index: {1}]  }
   0x1   :  { %2574 = sst [smem:[#allocation9_spill]] %s2563_s0 }
   0x2   :  { %2575 = sst [smem:[#allocation10_spill]] %s2564_s1 }
   0x3   :  { %15 = vsyncpa [#allocation4], 0 }
   0x4   :  { %17 = vsyncpa [#allocation4 + $0x1], 0 }
   0x5   :  { %18 = vsyncpa [#allocation6], 0 }
   0x6   :  { %20 = vsyncpa [#allocation6 + $0x1], 0  ;;  %s2201_s30 = smov 0   ;;  %s2203_s10 = smov 0  }
   0x7   :  { %s2205_s11 = smov 0   ;;  %s2207_s12 = smov 0  }
   0x8 LB: > { %s1689_s13 = sadd.s32 4294967295, %s2139_s12   ;;  %s1690_s14 = sadd.s32 4294967294, %s2139_s12   ;;  %s2139_s12 = sphi %s2207_s12, %s2584_s12   ;;  %s2135_s11 = sphi %s2205_s11, %s2583_s11   ;;  %s2131_s10 = sphi %s2203_s10, %s2582_s10   ;;  %s2127_s30 = sphi %s2201_s30, %s2581_s30  }
   0x9   : > { %s2224_s15 = sadd.s32 1, %s2139_s12   ;;  %s33_s16 = sadd.s32 1, %s2135_s11 }
   0xa   : > { %s30_s17 = ssub.s32 %s2139_s12, %s2224_s15  ;;  %p40_p0 = scmp.ne.s32.totalorder %s2135_s11, %s2131_s10 }
   0xb   : > { %p31_p1 = scmp.eq.s32.totalorder %s30_s17, 0  ;;  %p41_p2 = scmp.eq.s32.totalorder %s2139_s12, 0 }
   0xc   : > { %p217_p3 = scmp.eq.s32.totalorder %s1689_s13, 1  ;;  %p222_p4 = scmp.ne.s32.totalorder %s2131_s10, %s2127_s30 }
   0xd   : > { %s2237_s18 = scalar_select %p31_p1, %s2135_s11, %s33_s16  }
   0xe   : > { %p42_p5 = por %p41_p2, %p40_p0  ;;  %p2239_p6 = por %p217_p3, %p40_p0 }
   0xf   : > { %p223_p7 = scmp.eq.s32.totalorder %s1690_s14, 1  ;;  %p1692_p9 = scmp.ge.s32.totalorder %s2139_s12, 2 }
  0x11   : > { %p2243_p8 = por %p223_p7, %p222_p4  ;;  %286 = sbr.rel (%p1692_p9) target bundleno = 36 (0x24), region = 44 }
  0x16   : > { %289 = sbr.rel (!%p42_p5) target bundleno = 36 (0x24), region = 48  ;;  %s291_s21 = sand.u32 (%p42_p5), 1, %s2135_s11  }
  0x17   : > { %s1832_s22 = sshll.u32 (%p42_p5), %s2139_s12, 3  ;;  %s1693_s23 = sshll.u32 (%p42_p5), %s291_s21, 5 }
  0x18   : > { %s2578_s0 = sld [smem:[#allocation9_spill]] (%p42_p5)  ;;  %s293_s27 = scalar_lea.vmem (%p42_p5), [#allocation2], %s1693_s23 }
  0x1e   : > { %s296_s26 = scalar_lea.vmem %s2578_s0, %s1832_s22 }
  0x1f   : > { %v331_v0 = vld [vmem:[%s296_s26] sm:$0xff]  ;;  %v333_v1 = vld [vmem:[%s296_s26 + $0x10] sm:$0xff] }
  0x20   : > { %v335_v2 = vld [vmem:[%s296_s26 + $0x20] sm:$0xff]  ;;  %332 = vst [vmem:[%s293_s27] sm:$0xff] %v331_v0  ;;  %v337_v3 = vld [vmem:[%s296_s26 + $0x30] sm:$0xff] }
  0x21   : > { %334 = vst [vmem:[%s293_s27 + $0x8] sm:$0xff] %v333_v1 }
  0x22   : > { %336 = vst [vmem:[%s293_s27 + $0x10] sm:$0xff] %v335_v2 }
  0x23   : > { %338 = vst [vmem:[%s293_s27 + $0x18] sm:$0xff] %v337_v3 }
  0x24 PF: > { %p1696_p10 = scmp.ge.s32.totalorder %s2139_s12, 1  ;;  %p343_p11 = scmp.lt.s32.totalorder %s2139_s12, 3 }
  0x26   : > { %p344_p12 = pnand %p1696_p10, %p343_p11 }
  0x27   : > { %s2258_s28 = sand.u32 (!%p344_p12), 1, %s2131_s10   ;;  %s2579_s1 = sld [smem:[#allocation10_spill]] (!%p344_p12) }
  0x28   : > { %347 = sbr.rel (%p344_p12) target bundleno = 1227 (0x4cb), region = 86  ;;  %s1697_s16 = sshll.u32 (!%p344_p12), %s2258_s28, 5 }
  0x29   : > { %s352_s24 = scalar_lea.vmem (!%p344_p12), [#allocation2], %s1697_s16  ;;  %s2573_s17 = sshll.u32 (!%p344_p12), %s2258_s28, 6 }
  0x2a   : > { %s2403_s21 = scalar_lea.vmem (!%p344_p12), [#allocation3], %s2573_s17  ;;  %s2505_s22 = sshll.u32 (!%p344_p12), %s1689_s13, 4 }
  0x2b   : > { %s1569_s16 = sshll.u32 (!%p344_p12), %s2403_s21, 4  ;;  %s1568_s25 = scalar_lea.hbm (!%p344_p12), %s2571_s8, %s2505_s22  ;;  %s1570_s16 = int_to_ptr.vmem [resolvable:$true] %s1569_s16 }
  0x2c   : > { %s1571_s26 = sshll.u32 (!%p344_p12), %s1568_s25, 4  ;;  %s1552_s27 = scalar_lea.sflag (!%p344_p12), [#allocation4], %s2258_s28  ;;  %s1572_s26 = int_to_ptr.hbm [resolvable:$true] %s1571_s26 }
  0x2d   : > { %v531_v4 = vld [vmem:[%s2570_s7 + $0x30] sm:$0xff]  ;;  %v2141_v5 = vmov 0   ;;  %v529_v7 = vld [vmem:[%s2570_s7 + $0x20] sm:$0xff]  ;;  %v532_v8 = vld [vmem:[%s2570_s7 + $0x38] sm:$0xff]  ;;  %vm446_vm0 = vcmask 261120   ;;  %vm722_vm1 = vcmask 523264  }
  0x2e   : > { %1911 = vset.pattern.permute.xlu0 %v2141_v5  ;;  %v2264_v6 = vpack.c.bf16 %v531_v4, %v531_v4  ;;  %1912 = vset.pattern.permute.xlu1 %v2141_v5  ;;  %v2272_v9 = vpack.c.bf16 %v529_v7, %v529_v7  ;;  %v1726_v10 = vld [vmem:[%s352_s24 + $0x10] sm:$0xf]  ;;  %v1836_v11 = vld [vmem:[%s352_s24 + $0x14] sm:$0xf0]  ;;  %v1835_v12 = vld [vmem:[%s352_s24 + $0x14] sm:$0xf]  ;;  %v2279_v23 = vpack.c.bf16 %v532_v8, %v532_v8 }
  0x2f   : > { %1913 = vset.pattern.permute.xlu2 %v2141_v5  ;;  %v1727_v13 = vor.u32 %v1836_v11, %v1726_v10  ;;  %v1728_v14 = vld [vmem:[%s352_s24 + $0x18] sm:$0xf0]  ;;  %v1718_v15 = vld [vmem:[%s352_s24] sm:$0xf]  ;;  %v1834_v16 = vld [vmem:[%s352_s24 + $0x4] sm:$0xf0] }
  0x30   : > { %597 = vperm.xlu0 %1911, %v2264_v6   ;;  %579 = vperm.xlu1 %1912, %v2272_v9   ;;  %v1731_v17 = vor.u32 %v1835_v12, %v1728_v14  ;;  %v1833_v18 = vld [vmem:[%s352_s24 + $0x4] sm:$0xf]  ;;  %v1720_v19 = vld [vmem:[%s352_s24 + $0x8] sm:$0xf0]  ;;  %v1719_v21 = vor.u32 %v1834_v16, %v1718_v15  ;;  %v2318_v31 = vld [vmem:[%s2570_s7 + $0x10] sm:$0xff]  ;;  %vm956_vm2 = vcmask 392192  }
  0x31   : > { %v530_v20 = vld [vmem:[%s2570_s7 + $0x28] sm:$0xff]  ;;  %465 = vmatpush.bf16.msra.mxu0 %v1727_v13  ;;  %v1723_v22 = vor.u32 %v1833_v18, %v1720_v19  ;;  %v1837_v25 = vld [vmem:[%s2579_s1] sm:$0xff]  ;;  %v2322_v32 = vpack.c.bf16 %v2318_v31, %v2318_v31  ;;  %v2328_v33 = vld [vmem:[%s2570_s7 + $0x18] sm:$0xff]  ;;  %v2142_v50 = vmov 839922192   ;;  %s2059_s17 = sshra.s32 %s1572_s26, 4  ;;  %s2060_s17 = int_to_ptr.hbm [resolvable:$true] %s2059_s17 }
  0x32   : > { %494 = vmatpush.bf16.msra.mxu1 %v1731_v17  ;;  %v2281_v24 = vpack.c.bf16 %v530_v20, %v530_v20  ;;  %v2291_v26 = vld [vmem:[%s2570_s7] sm:$0xff]  ;;  %v2297_v27 = vld [vmem:[%s2570_s7 + $0x8] sm:$0xff]  ;;  %v2332_v34 = vpack.c.bf16 %v2328_v33, %v2328_v33  ;;  %v1839_v35 = vld [vmem:[%s2579_s1 + $0x10] sm:$0xff]  ;;  %v547_v51 = vunpack.c.l.s4 %v2142_v50  ;;  %s2061_s29 = scalar_lea.hbm %s2060_s17, 64  ;;  %s2065_s13 = scalar_lea.hbm %s2571_s8, 128 }
  0x33   : > { %v2302_v28 = vpack.c.bf16 %v2291_v26, %v2291_v26  ;;  %v2306_v29 = vpack.c.bf16 %v2297_v27, %v2297_v27  ;;  %v1838_v30 = vld [vmem:[%s2579_s1 + $0x8] sm:$0xff]  ;;  %561 = vperm.xlu2 %1913, %v2322_v32   ;;  %v1840_v36 = vld [vmem:[%s2579_s1 + $0x18] sm:$0xff]  ;;  %p2062_p13 = scmp.ne.s32.totalorder %s2060_s17, %s2061_s29  ;;  %p2066_p2 = scmp.lt.s32.totalorder %s2060_s17, %s2571_s8 }
  0x34   : > { %v2347_v57 = vunpack.c.0.s8 %v547_v51  ;;  %p2067_p3 = scmp.lt.s32.totalorder %s2065_s13, %s2061_s29 }
  0x35   : > { %466 = vmatpush.bf16.msra.mxu0 %v1719_v21  ;;  %p2063_p0 = pnand %p2062_p13, %p2239_p6 }
  0x36   : > { %495 = vmatpush.bf16.msra.mxu1 %v1723_v22  ;;  %p2068_p4 = por %p2067_p3, %p2066_p2 }
  0x37   : > { %p2064_p1 = pneg %p2063_p0 }
  0x38   : > { %606 = vperm.xlu0 %1911, %v2279_v23   ;;  %588 = vperm.xlu1 %1912, %v2281_v24  }
  0x39   : > { %1732 = vmatmul.msk.bf16.vlgmr.msra.gmra.mxu0 %vm446_vm0, %v1837_v25  ;;  %1736 = vmatmul.msk.bf16.vlgmr.msra.gmra.mxu1 %vm446_vm0, %v1837_v25  ;;  %p2069_p5 = pnand %p2068_p4, %p2064_p1 }
  0x3b   : > { %570 = vperm.xlu2 %1913, %v2332_v34  }
  0x40   : > { %543 = vperm.xlu0 %1911, %v2302_v28   ;;  %552 = vperm.xlu1 %1912, %v2306_v29  }
  0x49   : > { %1733 = vmatmul.msk.bf16.gmra.mxu0 %vm446_vm0, %v1838_v30  ;;  %1737 = vmatmul.msk.bf16.gmra.mxu1 %vm446_vm0, %v1838_v30 }
  0x59   : > { %1734 = vmatmul.msk.bf16.gmra.mxu0 %vm446_vm0, %v1839_v35  ;;  %1738 = vmatmul.msk.bf16.gmra.mxu1 %vm446_vm0, %v1839_v35 }
  0x69   : > { %1735 = vmatmul.msk.bf16.gmra.mxu0 %vm446_vm0, %v1840_v36  ;;  %1739 = vmatmul.msk.bf16.gmra.mxu1 %vm446_vm0, %v1840_v36 }
  0x8d   : > { %v562_v52 = vpop.permute.xlu2 %561 }
  0x8e   : > { %v567_v11 = vperm.slane %v562_v52, %v2347_v57 }
  0x90   : > { %v631_v25 = vunpack.c.l.bf16 %v567_v11 }
  0x95   : > { %v571_v2 = vpop.permute.xlu2 %570 }
  0x96   : > { %v576_v12 = vperm.slane %v571_v2, %v2347_v57 }
  0x98   : > { %v632_v36 = vunpack.c.l.bf16 %v576_v12 }
  0xa2   : > { %v598_v46 = vpop.permute.xlu0 %597  ;;  %v580_v47 = vpop.permute.xlu1 %579 }
  0xa3   : > { %v585_v60 = vperm.slane %v580_v47, %v2347_v57  ;;  %v603_v3 = vperm.slane %v598_v46, %v2347_v57 }
  0xa5   : > { %v633_v4 = vunpack.c.l.bf16 %v585_v60  ;;  %v635_v17 = vunpack.c.l.bf16 %v603_v3 }
  0xaa   : > { %v607_v54 = vpop.permute.xlu0 %606  ;;  %v589_v56 = vpop.permute.xlu1 %588 }
  0xab   : > { %v594_v58 = vperm.slane %v589_v56, %v2347_v57  ;;  %v612_v8 = vperm.slane %v607_v54, %v2347_v57 }
  0xad   : > { %v634_v63 = vunpack.c.l.bf16 %v594_v58  ;;  %v636_v21 = vunpack.c.l.bf16 %v612_v8 }
  0xb2   : > { %v544_v5 = vpop.permute.xlu0 %543  ;;  %v553_v10 = vpop.permute.xlu1 %552 }
  0xb3   : > { %v549_v15 = vperm.slane %v544_v5, %v2347_v57  ;;  %v558_v18 = vperm.slane %v553_v10, %v2347_v57  ;;  %v2143_v10 = vmov 1  }
  0xb4   : > { %1916 = vset.pattern.permute.xlu1 %v2143_v10  ;;  %1914 = vset.pattern.permute.xlu2 %v2143_v10 }
  0xb5   : > { %v630_v51 = vunpack.c.l.bf16 %v558_v18  ;;  %818 = vperm.xlu1 %1916, %v2322_v32   ;;  %836 = vperm.xlu2 %1914, %v2272_v9  }
  0xb6   : > { %v468_v37 = vpop.f32.mrf.mxu0  ;;  %v497_v38 = vpop.f32.mrf.mxu1  ;;  %1915 = vset.pattern.permute.xlu0 %v2143_v10  ;;  %v1843_v10 = vld [vmem:[%s2565_s2 + $0x10] sm:$0xff] }
  0xb7   : > { %v2345_v39 = vpack.c.bf16 %v497_v38, %v468_v37  ;;  %845 = vperm.xlu0 %1915, %v2281_v24  }
  0xb9   : > { %v613_v50 = vunpack.c.l.bf16 %v2345_v39 }
  0xbd   : > { %800 = vperm.xlu1 %1916, %v2302_v28   ;;  %827 = vperm.xlu2 %1914, %v2332_v34  }
  0xbe   : > { %v470_v40 = vpop.f32.mrf.mxu0  ;;  %v499_v41 = vpop.f32.mrf.mxu1 }
  0xbf   : > { %v518_v22 = vpack.c.bf16 %v499_v41, %v470_v40 }
  0xc1   : > { %v616_v3 = vunpack.c.h.bf16 %v518_v22 }
  0xc3   : > { %v640_v18 = vadd.f32 %v630_v51, %v616_v3 }
  0xc5   : > { %809 = vperm.xlu2 %1914, %v2306_v29  }
  0xc6   : > { %v473_v42 = vpop.f32.mrf.mxu0  ;;  %v502_v43 = vpop.f32.mrf.mxu1 }
  0xc7   : > { %v519_v19 = vpack.c.bf16 %v502_v43, %v473_v42  ;;  %v615_v43 = vunpack.c.l.bf16 %v518_v22 }
  0xc9   : > { %v617_v52 = vunpack.c.l.bf16 %v519_v19  ;;  %v618_v54 = vunpack.c.h.bf16 %v519_v19  ;;  %v639_v11 = vadd.f32 %v630_v51, %v615_v43 }
  0xcb   : > { %v642_v12 = vadd.f32 %v631_v25, %v618_v54 }
  0xce   : > { %v475_v44 = vpop.f32.mrf.mxu0  ;;  %v504_v45 = vpop.f32.mrf.mxu1 }
  0xcf   : > { %v520_v13 = vpack.c.bf16 %v504_v45, %v475_v44  ;;  %v629_v44 = vunpack.c.l.bf16 %v549_v15 }
  0xd1   : > { %v619_v37 = vunpack.c.l.bf16 %v520_v13  ;;  %v620_v42 = vunpack.c.h.bf16 %v520_v13 }
  0xd6   : > { %v478_v48 = vpop.f32.mrf.mxu0  ;;  %v507_v49 = vpop.f32.mrf.mxu1 }
  0xd7   : > { %v521_v61 = vpack.c.bf16 %v507_v49, %v478_v48 }
  0xd9   : > { %v621_v7 = vunpack.c.l.bf16 %v521_v61  ;;  %v622_v38 = vunpack.c.h.bf16 %v521_v61 }
  0xdb   : > { %v645_v20 = vadd.f32 %v633_v4, %v621_v7  ;;  %v646_v56 = vadd.f32 %v633_v4, %v622_v38 }
  0xde   : > { %v480_v53 = vpop.f32.mrf.mxu0  ;;  %v509_v55 = vpop.f32.mrf.mxu1 }
  0xdf   : > { %v522_v59 = vpack.c.bf16 %v509_v55, %v480_v53  ;;  %v643_v55 = vadd.f32 %v632_v36, %v619_v37 }
  0xe1   : > { %v623_v0 = vunpack.c.l.bf16 %v522_v59  ;;  %v624_v30 = vunpack.c.h.bf16 %v522_v59 }
  0xe3   : > { %v647_v14 = vadd.f32 %v634_v63, %v623_v0  ;;  %v648_v53 = vadd.f32 %v634_v63, %v624_v30  ;;  %v641_v0 = vadd.f32 %v631_v25, %v617_v52  ;;  %v614_v63 = vunpack.c.h.bf16 %v2345_v39 }
  0xe5   : > { %v657_v46 = vpack.c.bf16 %v647_v14, %v645_v20  ;;  %v658_v5 = vpack.c.bf16 %v648_v53, %v646_v56  ;;  %v655_v4 = vpack.c.bf16 %v643_v55, %v641_v0 }
  0xe6   : > { %v483_v62 = vpop.f32.mrf.mxu0  ;;  %v512_v1 = vpop.f32.mrf.mxu1 }
  0xe7   : > { %v523_v16 = vpack.c.bf16 %v512_v1, %v483_v62  ;;  %v669_v58 = vunpack.c.l.bf16 %v657_v46  ;;  %v644_v1 = vadd.f32 %v632_v36, %v620_v42  ;;  %v671_v2 = vunpack.c.h.bf16 %v657_v46 }
  0xe8   : > { %v670_v39 = vunpack.c.l.bf16 %v658_v5  ;;  %v672_v20 = vunpack.c.h.bf16 %v658_v5  ;;  %v665_v25 = vunpack.c.l.bf16 %v655_v4  ;;  %v667_v30 = vunpack.c.h.bf16 %v655_v4  ;;  %v1841_v5 = vld [vmem:[%s2565_s2] sm:$0xff] }
  0xe9   : > { %v625_v45 = vunpack.c.l.bf16 %v523_v16  ;;  %v626_v48 = vunpack.c.h.bf16 %v523_v16  ;;  %1929 = vtanh.f32 %v669_v58  ;;  %v637_v16 = vadd.f32 %v629_v44, %v613_v50 }
  0xea   : > { %1931 = vtanh.f32 %v671_v2  ;;  %v656_v19 = vpack.c.bf16 %v644_v1, %v642_v12 }
  0xeb   : > { %v649_v59 = vadd.f32 %v635_v17, %v625_v45  ;;  %v650_v60 = vadd.f32 %v635_v17, %v626_v48  ;;  %v653_v22 = vpack.c.bf16 %v639_v11, %v637_v16 }
  0xec   : > { %v666_v37 = vunpack.c.l.bf16 %v656_v19  ;;  %v668_v46 = vunpack.c.h.bf16 %v656_v19 }
  0xed   : > { %v661_v45 = vunpack.c.l.bf16 %v653_v22  ;;  %v663_v48 = vunpack.c.h.bf16 %v653_v22 }
  0xee   : > { %v485_v35 = vpop.f32.mrf.mxu0  ;;  %v514_v47 = vpop.f32.mrf.mxu1 }
  0xef   : > { %v524_v49 = vpack.c.bf16 %v514_v47, %v485_v35  ;;  %v1930_v35 = vpop.eup %1929 }
  0xf0   : > { %v1932_v38 = vpop.eup %1931 }
  0xf1   : > { %v627_v40 = vunpack.c.l.bf16 %v524_v49  ;;  %v628_v41 = vunpack.c.h.bf16 %v524_v49  ;;  %v697_v54 = vpack.c.bf16 %v1932_v38, %v1930_v35 }
  0xf3   : > { %v651_v61 = vadd.f32 %v636_v21, %v627_v40  ;;  %v652_v62 = vadd.f32 %v636_v21, %v628_v41  ;;  %v638_v21 = vadd.f32 %v629_v44, %v614_v63 }
  0xf5   : > { %v659_v7 = vpack.c.bf16 %v651_v61, %v649_v59  ;;  %v660_v8 = vpack.c.bf16 %v652_v62, %v650_v60  ;;  %v654_v36 = vpack.c.bf16 %v640_v18, %v638_v21 }
  0xf7   : > { %v673_v13 = vunpack.c.l.bf16 %v659_v7  ;;  %v675_v14 = vunpack.c.h.bf16 %v659_v7  ;;  %v674_v15 = vunpack.c.l.bf16 %v660_v8  ;;  %v676_v17 = vunpack.c.h.bf16 %v660_v8  ;;  %v1842_v8 = vld [vmem:[%s2565_s2 + $0x8] sm:$0xff] }
  0xf8   : > { %v662_v50 = vunpack.c.l.bf16 %v654_v36  ;;  %v664_v42 = vunpack.c.h.bf16 %v654_v36 }
  0xf9   : > { %1933 = vtanh.f32 %v673_v13 }
  0xfa   : > { %1935 = vtanh.f32 %v675_v14 }
  0xfb   : > { %1937 = vtanh.f32 %v674_v15 }
  0xfc   : > { %1939 = vtanh.f32 %v676_v17 }
  0xfd   : > { %1941 = vtanh.f32 %v670_v39 }
  0xfe   : > { %1943 = vtanh.f32 %v672_v20 }
  0xff   : > { %v1934_v47 = vpop.eup %1933  ;;  %1945 = vtanh.f32 %v665_v25 }
 0x100   : > { %v1936_v44 = vpop.eup %1935  ;;  %1947 = vtanh.f32 %v667_v30 }
 0x101   : > { %v1938_v49 = vpop.eup %1937  ;;  %v699_v51 = vpack.c.bf16 %v1936_v44, %v1934_v47  ;;  %1949 = vtanh.f32 %v666_v37 }
 0x102   : > { %v1940_v52 = vpop.eup %1939  ;;  %1951 = vtanh.f32 %v668_v46 }
 0x103   : > { %v1942_v43 = vpop.eup %1941  ;;  %736 = vmatpush.bf16.msra.mxu2 %v699_v51  ;;  %v700_v53 = vpack.c.bf16 %v1940_v52, %v1938_v49  ;;  %1953 = vtanh.f32 %v661_v45 }
 0x104   : > { %v1944_v40 = vpop.eup %1943  ;;  %1955 = vtanh.f32 %v663_v48 }
 0x105   : > { %v1946_v41 = vpop.eup %1945  ;;  %760 = vmatpush.bf16.msra.mxu3 %v700_v53  ;;  %1957 = vtanh.f32 %v662_v50  ;;  %v698_v58 = vpack.c.bf16 %v1944_v40, %v1942_v43 }
 0x106   : > { %v1948_v55 = vpop.eup %1947  ;;  %1959 = vtanh.f32 %v664_v42 }
 0x107   : > { %v1950_v56 = vpop.eup %1949  ;;  %737 = vmatpush.bf16.msra.mxu2 %v697_v54  ;;  %v695_v61 = vpack.c.bf16 %v1948_v55, %v1946_v41 }
 0x108   : > { %v1952_v59 = vpop.eup %1951 }
 0x109   : > { %v1954_v60 = vpop.eup %1953  ;;  %761 = vmatpush.bf16.msra.mxu3 %v698_v58  ;;  %v696_v1 = vpack.c.bf16 %v1952_v59, %v1950_v56 }
 0x10a   : > { %v1956_v62 = vpop.eup %1955 }
 0x10b   : > { %v1958_v0 = vpop.eup %1957  ;;  %738 = vmatpush.bf16.msra.mxu2 %v695_v61  ;;  %v693_v3 = vpack.c.bf16 %v1956_v62, %v1954_v60 }
 0x10c   : > { %v1960_v2 = vpop.eup %1959 }
 0x10d   : > { %762 = vmatpush.bf16.msra.mxu3 %v696_v1  ;;  %v694_v7 = vpack.c.bf16 %v1960_v2, %v1958_v0 }
 0x10f   : > { %739 = vmatpush.bf16.msra.mxu2 %v693_v3  ;;  %v837_v13 = vpop.permute.xlu2 %836 }
 0x110   : > { %v842_v45 = vperm.slane %v837_v13, %v2347_v57 }
 0x111   : > { %763 = vmatpush.bf16.msra.mxu3 %v694_v7 }
 0x112   : > { %1752 = vmatmul.msk.bf16.vlgmr.msra.gmra.mxu2 %vm722_vm1, %v1841_v5  ;;  %v868_v41 = vunpack.c.l.bf16 %v842_v45 }
 0x114   : > { %1755 = vmatmul.msk.bf16.vlgmr.msra.gmra.mxu3 %vm722_vm1, %v1841_v5 }
 0x117   : > { %v828_v17 = vpop.permute.xlu2 %827 }
 0x118   : > { %v833_v39 = vperm.slane %v828_v17, %v2347_v57 }
 0x11a   : > { %v867_v30 = vunpack.c.l.bf16 %v833_v39 }
 0x11f   : > { %v810_v37 = vpop.permute.xlu2 %809 }
 0x120   : > { %v815_v48 = vperm.slane %v810_v37, %v2347_v57 }
 0x122   : > { %1753 = vmatmul.msk.bf16.gmra.mxu2 %vm722_vm1, %v1842_v8  ;;  %v865_v55 = vunpack.c.l.bf16 %v815_v48 }
 0x124   : > { %1756 = vmatmul.msk.bf16.gmra.mxu3 %vm722_vm1, %v1842_v8 }
 0x127   : > { %v819_v19 = vpop.permute.xlu1 %818 }
 0x128   : > { %v824_v21 = vperm.slane %v819_v19, %v2347_v57 }
 0x129   : > { %v846_v47 = vpop.permute.xlu0 %845 }
 0x12a   : > { %v866_v38 = vunpack.c.l.bf16 %v824_v21  ;;  %v851_v52 = vperm.slane %v846_v47, %v2347_v57 }
 0x12c   : > { %v869_v0 = vunpack.c.l.bf16 %v851_v52 }
 0x12f   : > { %v801_v44 = vpop.permute.xlu1 %800 }
 0x130   : > { %v806_v42 = vperm.slane %v801_v44, %v2347_v57 }
 0x132   : > { %1754 = vmatmul.msk.bf16.gmra.mxu2 %vm722_vm1, %v1843_v10  ;;  %v864_v2 = vunpack.c.l.bf16 %v806_v42 }
 0x134   : > { %1757 = vmatmul.msk.bf16.gmra.mxu3 %vm722_vm1, %v1843_v10 }
 0x195   : > { %v741_v63 = vpop.f32.mrf.mxu2 }
 0x197   : > { %v765_v11 = vpop.f32.mrf.mxu3 }
 0x198   : > { %v780_v43 = vpack.c.bf16 %v765_v11, %v741_v63  ;;  %v2144_v63 = vmov 2  }
 0x199   : > { %1918 = vset.pattern.permute.xlu1 %v2144_v63  ;;  %1917 = vset.pattern.permute.xlu0 %v2144_v63 }
 0x19a   : > { %v852_v3 = vunpack.c.l.bf16 %v780_v43  ;;  %v853_v11 = vunpack.c.h.bf16 %v780_v43  ;;  %943 = vperm.xlu1 %1918, %v2328_v33   ;;  %938 = vperm.xlu0 %1917, %v2318_v31  }
 0x19b   : > { %1919 = vset.pattern.permute.xlu2 %v2144_v63 }
 0x19c   : > { %928 = vperm.xlu2 %1919, %v2291_v26  }
 0x19d   : > { %v743_v12 = vpop.f32.mrf.mxu2 }
 0x19f   : > { %v767_v4 = vpop.f32.mrf.mxu3 }
 0x1a0   : > { %v781_v49 = vpack.c.bf16 %v767_v4, %v743_v12 }
 0x1a2   : > { %v854_v56 = vunpack.c.l.bf16 %v781_v49  ;;  %v855_v5 = vunpack.c.h.bf16 %v781_v49  ;;  %933 = vperm.xlu1 %1918, %v2297_v27  }
 0x1a4   : > { %v872_v12 = vadd.f32 %v865_v55, %v854_v56  ;;  %v873_v39 = vadd.f32 %v865_v55, %v855_v5 }
 0x1a5   : > { %v746_v14 = vpop.f32.mrf.mxu2 }
 0x1a7   : > { %v770_v15 = vpop.f32.mrf.mxu3 }
 0x1a8   : > { %v782_v22 = vpack.c.bf16 %v770_v15, %v746_v14 }
 0x1aa   : > { %v856_v46 = vunpack.c.l.bf16 %v782_v22  ;;  %v857_v58 = vunpack.c.h.bf16 %v782_v22 }
 0x1ac   : > { %v874_v53 = vadd.f32 %v866_v38, %v856_v46  ;;  %v875_v4 = vadd.f32 %v866_v38, %v857_v58 }
 0x1ad   : > { %v748_v16 = vpop.f32.mrf.mxu2 }
 0x1af   : > { %v772_v18 = vpop.f32.mrf.mxu3 }
 0x1b0   : > { %v783_v20 = vpack.c.bf16 %v772_v18, %v748_v16  ;;  %v870_v18 = vadd.f32 %v864_v2, %v852_v3 }
 0x1b2   : > { %v858_v35 = vunpack.c.l.bf16 %v783_v20  ;;  %v859_v54 = vunpack.c.h.bf16 %v783_v20 }
 0x1b4   : > { %v876_v50 = vadd.f32 %v867_v30, %v858_v35  ;;  %v877_v7 = vadd.f32 %v867_v30, %v859_v54  ;;  %v882_v30 = vpack.c.bf16 %v872_v12, %v870_v18 }
 0x1b5   : > { %v751_v25 = vpop.f32.mrf.mxu2 }
 0x1b6   : > { %v884_v59 = vpack.c.bf16 %v876_v50, %v874_v53  ;;  %v885_v20 = vpack.c.bf16 %v877_v7, %v875_v4  ;;  %v888_v26 = vunpack.c.l.bf16 %v882_v30  ;;  %v890_v47 = vunpack.c.h.bf16 %v882_v30 }
 0x1b7   : > { %v775_v36 = vpop.f32.mrf.mxu3 }
 0x1b8   : > { %v784_v51 = vpack.c.bf16 %v775_v36, %v751_v25  ;;  %v892_v13 = vunpack.c.l.bf16 %v884_v59  ;;  %v894_v19 = vunpack.c.h.bf16 %v884_v59  ;;  %v871_v25 = vadd.f32 %v864_v2, %v853_v11 }
 0x1b9   : > { %v893_v38 = vunpack.c.l.bf16 %v885_v20  ;;  %v895_v46 = vunpack.c.h.bf16 %v885_v20  ;;  %v2145_v11 = vmov 3  }
 0x1ba   : > { %v860_v61 = vunpack.c.l.bf16 %v784_v51  ;;  %v861_v62 = vunpack.c.h.bf16 %v784_v51  ;;  %1961 = vtanh.f32 %v892_v13  ;;  %v883_v37 = vpack.c.bf16 %v873_v39, %v871_v25  ;;  %1922 = vset.pattern.permute.xlu1 %v2145_v11  ;;  %1920 = vset.pattern.permute.xlu2 %v2145_v11 }
 0x1bb   : > { %1963 = vtanh.f32 %v894_v19  ;;  %1106 = vperm.xlu1 %1922, %v2322_v32   ;;  %1122 = vperm.xlu2 %1920, %v2272_v9  }
 0x1bc   : > { %v878_v14 = vadd.f32 %v868_v41, %v860_v61  ;;  %v879_v15 = vadd.f32 %v868_v41, %v861_v62  ;;  %v889_v44 = vunpack.c.l.bf16 %v883_v37  ;;  %v891_v49 = vunpack.c.h.bf16 %v883_v37  ;;  %v1844_v61 = vld [vmem:[%s2566_s3] sm:$0xff]  ;;  %1921 = vset.pattern.permute.xlu0 %v2145_v11 }
 0x1bd   : > { %v753_v40 = vpop.f32.mrf.mxu2  ;;  %1130 = vperm.xlu0 %1921, %v2281_v24  }
 0x1bf   : > { %v777_v60 = vpop.f32.mrf.mxu3 }
 0x1c0   : > { %v785_v1 = vpack.c.bf16 %v777_v60, %v753_v40  ;;  %v1962_v45 = vpop.eup %1961 }
 0x1c1   : > { %v1964_v48 = vpop.eup %1963 }
 0x1c2   : > { %v862_v8 = vunpack.c.l.bf16 %v785_v1  ;;  %v863_v10 = vunpack.c.h.bf16 %v785_v1  ;;  %v914_v54 = vpack.c.bf16 %v1964_v48, %v1962_v45 }
 0x1c3   : > { %1090 = vperm.xlu1 %1922, %v2302_v28   ;;  %1114 = vperm.xlu2 %1920, %v2332_v34  }
 0x1c4   : > { %v880_v16 = vadd.f32 %v869_v0, %v862_v8  ;;  %v881_v17 = vadd.f32 %v869_v0, %v863_v10  ;;  %v1845_v0 = vld [vmem:[%s2566_s3 + $0x8] sm:$0xff] }
 0x1c6   : > { %v886_v21 = vpack.c.bf16 %v880_v16, %v878_v14  ;;  %v887_v22 = vpack.c.bf16 %v881_v17, %v879_v15 }
 0x1c8   : > { %v896_v35 = vunpack.c.l.bf16 %v886_v21  ;;  %v897_v36 = vunpack.c.l.bf16 %v887_v22  ;;  %v898_v33 = vunpack.c.h.bf16 %v886_v21  ;;  %v899_v31 = vunpack.c.h.bf16 %v887_v22 }
 0x1ca   : > { %1965 = vtanh.f32 %v896_v35  ;;  %v1846_v35 = vld [vmem:[%s2567_s4] sm:$0xff] }
 0x1cb   : > { %1967 = vtanh.f32 %v898_v33  ;;  %1098 = vperm.xlu2 %1920, %v2306_v29   ;;  %v1847_v33 = vld [vmem:[%s2567_s4 + $0x8] sm:$0xff] }
 0x1cc   : > { %1969 = vtanh.f32 %v897_v36 }
 0x1cd   : > { %1971 = vtanh.f32 %v899_v31  ;;  %v1848_v31 = vld [vmem:[%s2567_s4 + $0x10] sm:$0xff] }
 0x1ce   : > { %1973 = vtanh.f32 %v893_v38 }
 0x1cf   : > { %1975 = vtanh.f32 %v895_v46 }
 0x1d0   : > { %v1966_v50 = vpop.eup %1965  ;;  %1977 = vtanh.f32 %v888_v26 }
 0x1d1   : > { %v1968_v51 = vpop.eup %1967  ;;  %1979 = vtanh.f32 %v890_v47 }
 0x1d2   : > { %v1970_v52 = vpop.eup %1969  ;;  %v916_v42 = vpack.c.bf16 %v1968_v51, %v1966_v50  ;;  %1981 = vtanh.f32 %v889_v44 }
 0x1d3   : > { %v1972_v43 = vpop.eup %1971  ;;  %1983 = vtanh.f32 %v891_v49 }
 0x1d4   : > { %v1974_v27 = vpop.eup %1973  ;;  %968 = vmatpush.bf16.msrb.mxu2 %v916_v42  ;;  %v917_v53 = vpack.c.bf16 %v1972_v43, %v1970_v52 }
 0x1d5   : > { %v1976_v40 = vpop.eup %1975 }
 0x1d6   : > { %v1978_v41 = vpop.eup %1977  ;;  %987 = vmatpush.bf16.msrb.mxu3 %v917_v53  ;;  %v915_v58 = vpack.c.bf16 %v1976_v40, %v1974_v27 }
 0x1d7   : > { %v1980_v55 = vpop.eup %1979 }
 0x1d8   : > { %v1982_v56 = vpop.eup %1981  ;;  %969 = vmatpush.bf16.msrb.mxu2 %v914_v54  ;;  %v912_v60 = vpack.c.bf16 %v1980_v55, %v1978_v41 }
 0x1d9   : > { %v1984_v59 = vpop.eup %1983 }
 0x1da   : > { %988 = vmatpush.bf16.msrb.mxu3 %v915_v58  ;;  %v913_v62 = vpack.c.bf16 %v1984_v59, %v1982_v56 }
 0x1dc   : > { %970 = vmatpush.bf16.msrb.mxu2 %v912_v60 }
 0x1de   : > { %989 = vmatpush.bf16.msrb.mxu3 %v913_v62 }
 0x1df   : > { %1766 = vmatmul.msk.bf16.vlgmr.msrb.gmra.mxu2 %vm956_vm2, %v1844_v61 }
 0x1e1   : > { %1768 = vmatmul.msk.bf16.vlgmr.msrb.gmra.mxu3 %vm956_vm2, %v1844_v61 }
 0x1ef   : > { %1767 = vmatmul.msk.bf16.gmra.mxu2 %vm956_vm2, %v1845_v0 }
 0x1f1   : > { %1769 = vmatmul.msk.bf16.gmra.mxu3 %vm956_vm2, %v1845_v0 }
 0x1f6   : > { %v929_v2 = vpop.permute.xlu2 %928 }
 0x20c   : > { %v944_v1 = vpop.permute.xlu1 %943  ;;  %v939_v14 = vpop.permute.xlu0 %938 }
 0x214   : > { %v934_v10 = vpop.permute.xlu1 %933 }
 0x215   : > { %v1123_v47 = vpop.permute.xlu2 %1122 }
 0x216   : > { %v1128_v61 = vperm.slane %v1123_v47, %v2347_v57 }
 0x21d   : > { %v1115_v48 = vpop.permute.xlu2 %1114 }
 0x21e   : > { %v1120_v52 = vperm.slane %v1115_v48, %v2347_v57 }
 0x220   : > { %v1152_v40 = vunpack.c.l.bf16 %v1120_v52 }
 0x225   : > { %v1099_v41 = vpop.permute.xlu2 %1098 }
 0x226   : > { %v1104_v62 = vperm.slane %v1099_v41, %v2347_v57 }
 0x22d   : > { %v1107_v51 = vpop.permute.xlu1 %1106 }
 0x22e   : > { %v1112_v43 = vperm.slane %v1107_v51, %v2347_v57 }
 0x22f   : > { %v1131_v56 = vpop.permute.xlu0 %1130 }
 0x230   : > { %v1151_v58 = vunpack.c.l.bf16 %v1112_v43 }
 0x235   : > { %v1091_v0 = vpop.permute.xlu1 %1090 }
 0x262   : > { %v972_v3 = vpop.f32.mrf.mxu2 }
 0x263   : > { %v973_v5 = vadd.f32 %v972_v3, %v929_v2 }
 0x264   : > { %v991_v7 = vpop.f32.mrf.mxu3 }
 0x265   : > { %1535 = vst [vmem:[%s2403_s21] sm:$0xff] %v973_v5  ;;  %v992_v8 = vadd.f32 %v991_v7, %v929_v2 }
 0x267   : > { %1536 = vst [vmem:[%s2403_s21 + $0x8] sm:$0xff] %v992_v8 }
 0x26a   : > { %v974_v63 = vpop.f32.mrf.mxu2 }
 0x26b   : > { %v975_v12 = vadd.f32 %v974_v63, %v934_v10  ;;  %v1096_v63 = vperm.slane %v1091_v0, %v2347_v57 }
 0x26c   : > { %v993_v4 = vpop.f32.mrf.mxu3 }
 0x26d   : > { %1537 = vst [vmem:[%s2403_s21 + $0x10] sm:$0xff] %v975_v12  ;;  %v994_v13 = vadd.f32 %v993_v4, %v934_v10  ;;  %v1007_v30 = vpack.c.bf16 %v975_v12, %v973_v5  ;;  %v1136_v5 = vperm.slane %v1131_v56, %v2347_v57  ;;  %v1153_v4 = vunpack.c.l.bf16 %v1128_v61 }
 0x26f   : > { %1538 = vst [vmem:[%s2403_s21 + $0x18] sm:$0xff] %v994_v13  ;;  %v1008_v36 = vpack.c.bf16 %v994_v13, %v992_v8  ;;  %v1150_v13 = vunpack.c.l.bf16 %v1104_v62 }
 0x272   : > { %v977_v15 = vpop.f32.mrf.mxu2 }
 0x273   : > { %v978_v16 = vadd.f32 %v977_v15, %v939_v14 }
 0x274   : > { %v996_v17 = vpop.f32.mrf.mxu3 }
 0x275   : > { %1539 = vst [vmem:[%s2403_s21 + $0x20] sm:$0xff] %v978_v16  ;;  %v997_v18 = vadd.f32 %v996_v17, %v939_v14  ;;  %v1154_v17 = vunpack.c.l.bf16 %v1136_v5 }
 0x277   : > { %1540 = vst [vmem:[%s2403_s21 + $0x28] sm:$0xff] %v997_v18 }
 0x27a   : > { %v979_v19 = vpop.f32.mrf.mxu2 }
 0x27b   : > { %v980_v39 = vadd.f32 %v979_v19, %v944_v1 }
 0x27c   : > { %v998_v20 = vpop.f32.mrf.mxu3 }
 0x27d   : > { %1541 = vst [vmem:[%s2403_s21 + $0x30] sm:$0xff] %v980_v39  ;;  %v999_v21 = vadd.f32 %v998_v20, %v944_v1  ;;  %v1009_v22 = vpack.c.bf16 %v980_v39, %v978_v16 }
 0x27f   : > { %1542 = vst [vmem:[%s2403_s21 + $0x38] sm:$0xff] %v999_v21  ;;  %1041 = vmatpush.bf16.msrb.mxu0 %v1009_v22  ;;  %v1010_v25 = vpack.c.bf16 %v999_v21, %v997_v18 }
 0x281   : > { %1065 = vmatpush.bf16.msrb.mxu1 %v1010_v25  ;;  %v1149_v25 = vunpack.c.l.bf16 %v1096_v63 }
 0x283   : > { %1042 = vmatpush.bf16.msrb.mxu0 %v1007_v30 }
 0x285   : > { %1066 = vmatpush.bf16.msrb.mxu1 %v1008_v36 }
 0x286   : > { %1782 = vmatmul.msk.bf16.vlgmr.msrb.gmra.mxu0 %vm446_vm0, %v1846_v35 }
 0x288   : > { %1785 = vmatmul.msk.bf16.vlgmr.msrb.gmra.mxu1 %vm446_vm0, %v1846_v35  ;;  %v2146_v35 = vmov 4  }
 0x289   : > { %1924 = vset.pattern.permute.xlu1 %v2146_v35  ;;  %1925 = vset.pattern.permute.xlu2 %v2146_v35 }
 0x28a   : > { %1366 = vperm.xlu1 %1924, %v2279_v23   ;;  %1923 = vset.pattern.permute.xlu0 %v2146_v35 }
 0x28b   : > { %1342 = vperm.xlu2 %1925, %v2272_v9   ;;  %1358 = vperm.xlu0 %1923, %v2264_v6  }
 0x292   : > { %1350 = vperm.xlu1 %1924, %v2281_v24  }
 0x293   : > { %1326 = vperm.xlu2 %1925, %v2322_v32   ;;  %1334 = vperm.xlu0 %1923, %v2332_v34  }
 0x296   : > { %1783 = vmatmul.msk.bf16.gmra.mxu0 %vm446_vm0, %v1847_v33 }
 0x298   : > { %1786 = vmatmul.msk.bf16.gmra.mxu1 %vm446_vm0, %v1847_v33 }
 0x29a   : > { %1310 = vperm.xlu1 %1924, %v2302_v28  }
 0x29b   : > { %1318 = vperm.xlu2 %1925, %v2306_v29   ;;  %v1850_v29 = vld [vmem:[%s2568_s5 + $0x8] sm:$0xff] }
 0x2a6   : > { %1784 = vmatmul.msk.bf16.gmra.mxu0 %vm446_vm0, %v1848_v31 }
 0x2a8   : > { %1787 = vmatmul.msk.bf16.gmra.mxu1 %vm446_vm0, %v1848_v31 }
 0x2fd   : > { %v1359_v35 = vpop.permute.xlu0 %1358 }
 0x303   : > { %v1044_v37 = vpop.f32.mrf.mxu0 }
 0x305   : > { %v1068_v38 = vpop.f32.mrf.mxu1 }
 0x306   : > { %v1083_v8 = vpack.c.bf16 %v1068_v38, %v1044_v37 }
 0x308   : > { %v1137_v21 = vunpack.c.l.bf16 %v1083_v8  ;;  %v1138_v31 = vunpack.c.h.bf16 %v1083_v8 }
 0x30a   : > { %v1155_v48 = vadd.f32 %v1149_v25, %v1137_v21  ;;  %v1156_v52 = vadd.f32 %v1149_v25, %v1138_v31  ;;  %v1367_v21 = vpop.permute.xlu1 %1366  ;;  %v1343_v25 = vpop.permute.xlu2 %1342 }
 0x30b   : > { %v1046_v46 = vpop.f32.mrf.mxu0 }
 0x30d   : > { %v1070_v26 = vpop.f32.mrf.mxu1 }
 0x30e   : > { %v1084_v1 = vpack.c.bf16 %v1070_v26, %v1046_v46 }
 0x310   : > { %v1139_v14 = vunpack.c.l.bf16 %v1084_v1  ;;  %v1140_v22 = vunpack.c.h.bf16 %v1084_v1 }
 0x312   : > { %v1157_v37 = vadd.f32 %v1150_v13, %v1139_v14  ;;  %v1327_v31 = vpop.permute.xlu2 %1326 }
 0x313   : > { %v1049_v45 = vpop.f32.mrf.mxu0 }
 0x315   : > { %v1073_v44 = vpop.f32.mrf.mxu1 }
 0x316   : > { %v1085_v27 = vpack.c.bf16 %v1073_v44, %v1049_v45  ;;  %v1158_v44 = vadd.f32 %v1150_v13, %v1140_v22 }
 0x318   : > { %v1141_v59 = vunpack.c.l.bf16 %v1085_v27  ;;  %v1142_v2 = vunpack.c.h.bf16 %v1085_v27 }
 0x31a   : > { %v1159_v10 = vadd.f32 %v1151_v58, %v1141_v59  ;;  %v1160_v15 = vadd.f32 %v1151_v58, %v1142_v2 }
 0x31b   : > { %v1051_v49 = vpop.f32.mrf.mxu0 }
 0x31d   : > { %v1075_v50 = vpop.f32.mrf.mxu1 }
 0x31e   : > { %v1086_v42 = vpack.c.bf16 %v1075_v50, %v1051_v49 }
 0x320   : > { %v1143_v54 = vunpack.c.l.bf16 %v1086_v42  ;;  %v1144_v60 = vunpack.c.h.bf16 %v1086_v42  ;;  %v1167_v42 = vpack.c.bf16 %v1157_v37, %v1155_v48  ;;  %v1351_v37 = vpop.permute.xlu1 %1350  ;;  %v1335_v48 = vpop.permute.xlu0 %1334 }
 0x322   : > { %v1161_v3 = vadd.f32 %v1152_v40, %v1143_v54  ;;  %v1162_v11 = vadd.f32 %v1152_v40, %v1144_v60  ;;  %v1173_v41 = vunpack.c.l.bf16 %v1167_v42  ;;  %v1175_v56 = vunpack.c.h.bf16 %v1167_v42 }
 0x323   : > { %v1054_v53 = vpop.f32.mrf.mxu0 }
 0x324   : > { %v1169_v16 = vpack.c.bf16 %v1161_v3, %v1159_v10  ;;  %v1170_v30 = vpack.c.bf16 %v1162_v11, %v1160_v15  ;;  %v1849_v11 = vld [vmem:[%s2568_s5] sm:$0xff] }
 0x325   : > { %v1078_v55 = vpop.f32.mrf.mxu1 }
 0x326   : > { %v1087_v7 = vpack.c.bf16 %v1078_v55, %v1054_v53  ;;  %v1177_v38 = vunpack.c.l.bf16 %v1169_v16  ;;  %v1178_v49 = vunpack.c.l.bf16 %v1170_v30  ;;  %v1168_v53 = vpack.c.bf16 %v1158_v44, %v1156_v52 }
 0x327   : > { %v1179_v40 = vunpack.c.h.bf16 %v1169_v16  ;;  %v1180_v6 = vunpack.c.h.bf16 %v1170_v30 }
 0x328   : > { %v1145_v19 = vunpack.c.l.bf16 %v1087_v7  ;;  %v1146_v39 = vunpack.c.h.bf16 %v1087_v7  ;;  %1985 = vtanh.f32 %v1177_v38  ;;  %v1174_v54 = vunpack.c.l.bf16 %v1168_v53 }
 0x329   : > { %1987 = vtanh.f32 %v1178_v49  ;;  %v1176_v59 = vunpack.c.h.bf16 %v1168_v53  ;;  %v1356_v38 = vperm.slane %v1351_v37, %v2347_v57 }
 0x32a   : > { %v1163_v46 = vadd.f32 %v1153_v4, %v1145_v19  ;;  %v1164_v26 = vadd.f32 %v1153_v4, %v1146_v39  ;;  %v1852_v4 = vld [vmem:[%s2568_s5 + $0x18] sm:$0xff] }
 0x32b   : > { %v1056_v12 = vpop.f32.mrf.mxu0  ;;  %v1394_v44 = vunpack.c.l.bf16 %v1356_v38 }
 0x32d   : > { %v1080_v18 = vpop.f32.mrf.mxu1 }
 0x32e   : > { %v1088_v20 = vpack.c.bf16 %v1080_v18, %v1056_v12  ;;  %v1986_v55 = vpop.eup %1985  ;;  %v1851_v12 = vld [vmem:[%s2568_s5 + $0x10] sm:$0xff] }
 0x32f   : > { %v1988_v58 = vpop.eup %1987 }
 0x330   : > { %v1147_v36 = vunpack.c.l.bf16 %v1088_v20  ;;  %v1148_v33 = vunpack.c.h.bf16 %v1088_v20 }
 0x332   : > { %v1165_v47 = vadd.f32 %v1154_v17, %v1147_v36  ;;  %v1166_v45 = vadd.f32 %v1154_v17, %v1148_v33 }
 0x334   : > { %v1171_v50 = vpack.c.bf16 %v1165_v47, %v1163_v46  ;;  %v1172_v51 = vpack.c.bf16 %v1166_v45, %v1164_v26  ;;  %v1348_v26 = vperm.slane %v1343_v25, %v2347_v57 }
 0x336   : > { %v1181_v23 = vunpack.c.l.bf16 %v1171_v50  ;;  %v1182_v43 = vunpack.c.l.bf16 %v1172_v51  ;;  %v1183_v27 = vunpack.c.h.bf16 %v1171_v50  ;;  %v1184_v9 = vunpack.c.h.bf16 %v1172_v51 }
 0x337   : > { %v1393_v51 = vunpack.c.l.bf16 %v1348_v26 }
 0x338   : > { %1989 = vtanh.f32 %v1181_v23  ;;  %v1340_v23 = vperm.slane %v1335_v48, %v2347_v57 }
 0x339   : > { %1991 = vtanh.f32 %v1182_v43  ;;  %v1319_v43 = vpop.permute.xlu2 %1318 }
 0x33a   : > { %1993 = vtanh.f32 %v1183_v27  ;;  %v1311_v27 = vpop.permute.xlu1 %1310 }
 0x33b   : > { %1995 = vtanh.f32 %v1184_v9 }
 0x33c   : > { %1997 = vtanh.f32 %v1179_v40 }
 0x33d   : > { %1999 = vtanh.f32 %v1180_v6  ;;  %v1364_v6 = vperm.slane %v1359_v35, %v2347_v57 }
 0x33e   : > { %v1990_v60 = vpop.eup %1989  ;;  %2001 = vtanh.f32 %v1173_v41 }
 0x33f   : > { %v1992_v61 = vpop.eup %1991  ;;  %2003 = vtanh.f32 %v1174_v54  ;;  %v1332_v54 = vperm.slane %v1327_v31, %v2347_v57 }
 0x340   : > { %v1994_v24 = vpop.eup %1993  ;;  %2005 = vtanh.f32 %v1175_v56 }
 0x341   : > { %v1996_v32 = vpop.eup %1995  ;;  %2007 = vtanh.f32 %v1176_v59  ;;  %v1201_v34 = vpack.c.bf16 %v1994_v24, %v1990_v60  ;;  %v1372_v59 = vperm.slane %v1367_v21, %v2347_v57  ;;  %v1324_v60 = vperm.slane %v1319_v43, %v2347_v57 }
 0x342   : > { %v1998_v62 = vpop.eup %1997  ;;  %v1202_v0 = vpack.c.bf16 %v1996_v32, %v1992_v61  ;;  %v1316_v61 = vperm.slane %v1311_v27, %v2347_v57  ;;  %v1392_v24 = vunpack.c.l.bf16 %v1340_v23 }
 0x343   : > { %v2000_v1 = vpop.eup %1999  ;;  %1248 = vmatpush.bf16.msra.mxu2 %v1201_v34  ;;  %v1199_v5 = vpack.c.bf16 %v1998_v62, %v1986_v55 }
 0x344   : > { %v2002_v2 = vpop.eup %2001  ;;  %1277 = vmatpush.bf16.msra.mxu3 %v1202_v0  ;;  %v1200_v8 = vpack.c.bf16 %v2000_v1, %v1988_v58 }
 0x345   : > { %v2004_v3 = vpop.eup %2003 }
 0x346   : > { %v2006_v7 = vpop.eup %2005 }
 0x347   : > { %v2008_v10 = vpop.eup %2007  ;;  %1249 = vmatpush.bf16.msra.mxu2 %v1199_v5  ;;  %v1197_v63 = vpack.c.bf16 %v2006_v7, %v2002_v2 }
 0x348   : > { %1278 = vmatpush.bf16.msra.mxu3 %v1200_v8  ;;  %v1198_v28 = vpack.c.bf16 %v2008_v10, %v2004_v3  ;;  %v1395_v3 = vunpack.c.l.bf16 %v1364_v6  ;;  %v1391_v10 = vunpack.c.l.bf16 %v1332_v54  ;;  %v2147_v54 = vmov 5  }
 0x349   : > { %1927 = vset.pattern.permute.xlu1 %v2147_v54  ;;  %1926 = vset.pattern.permute.xlu0 %v2147_v54 }
 0x34a   : > { %1928 = vset.pattern.permute.xlu2 %v2147_v54 }
 0x34b   : > { %1250 = vmatpush.bf16.msra.mxu2 %v1197_v63 }
 0x34c   : > { %1279 = vmatpush.bf16.msra.mxu3 %v1198_v28 }
 0x34e   : > { %1804 = vmatmul.msk.bf16.vlgmr.msra.gmra.mxu2 %vm956_vm2, %v1849_v11 }
 0x34f   : > { %1808 = vmatmul.msk.bf16.vlgmr.msra.gmra.mxu3 %vm956_vm2, %v1849_v11 }
 0x35e   : > { %1805 = vmatmul.msk.bf16.gmra.mxu2 %vm956_vm2, %v1850_v29 }
 0x35f   : > { %1809 = vmatmul.msk.bf16.gmra.mxu3 %vm956_vm2, %v1850_v29  ;;  %v1396_v29 = vunpack.c.l.bf16 %v1372_v59  ;;  %v2042_v59 = vld [vmem:[%s2570_s7] sm:$0xff] }
 0x360   : > { %1466 = vperm.xlu0 %1926, %v2042_v59  }
 0x36e   : > { %1806 = vmatmul.msk.bf16.gmra.mxu2 %vm956_vm2, %v1851_v12 }
 0x36f   : > { %1810 = vmatmul.msk.bf16.gmra.mxu3 %vm956_vm2, %v1851_v12  ;;  %v1390_v12 = vunpack.c.l.bf16 %v1324_v60 }
 0x37e   : > { %1807 = vmatmul.msk.bf16.gmra.mxu2 %vm956_vm2, %v1852_v4 }
 0x37f   : > { %1811 = vmatmul.msk.bf16.gmra.mxu3 %vm956_vm2, %v1852_v4 }
 0x3d1   : > { %v1252_v13 = vpop.f32.mrf.mxu2 }
 0x3d2   : > { %v1281_v14 = vpop.f32.mrf.mxu3 }
 0x3d3   : > { %v2468_v15 = vpack.c.bf16 %v1281_v14, %v1252_v13 }
 0x3d5   : > { %v1373_v35 = vunpack.c.l.bf16 %v2468_v15  ;;  %v1374_v37 = vunpack.c.h.bf16 %v2468_v15 }
 0x3d9   : > { %v1254_v16 = vpop.f32.mrf.mxu2 }
 0x3da   : > { %v1283_v17 = vpop.f32.mrf.mxu3 }
 0x3db   : > { %v1302_v34 = vpack.c.bf16 %v1283_v17, %v1254_v16 }
 0x3dd   : > { %v1375_v57 = vunpack.c.l.bf16 %v1302_v34  ;;  %v1376_v21 = vunpack.c.h.bf16 %v1302_v34  ;;  %v2043_v34 = vld [vmem:[%s2570_s7 + $0x10] sm:$0xff] }
 0x3de   : > { %1474 = vperm.xlu2 %1928, %v2043_v34  }
 0x3df   : > { %v1400_v48 = vadd.f32 %v1390_v12, %v1376_v21 }
 0x3e1   : > { %v1257_v18 = vpop.f32.mrf.mxu2 }
 0x3e2   : > { %v1286_v19 = vpop.f32.mrf.mxu3 }
 0x3e3   : > { %v1303_v55 = vpack.c.bf16 %v1286_v19, %v1257_v18 }
 0x3e5   : > { %v1377_v63 = vunpack.c.l.bf16 %v1303_v55  ;;  %v1378_v14 = vunpack.c.h.bf16 %v1303_v55 }
 0x3e7   : > { %v1402_v38 = vadd.f32 %v1391_v10, %v1378_v14 }
 0x3e9   : > { %v1259_v39 = vpop.f32.mrf.mxu2 }
 0x3ea   : > { %v1288_v20 = vpop.f32.mrf.mxu3 }
 0x3eb   : > { %v1304_v53 = vpack.c.bf16 %v1288_v20, %v1259_v39 }
 0x3ed   : > { %v1379_v62 = vunpack.c.l.bf16 %v1304_v53  ;;  %v1380_v28 = vunpack.c.h.bf16 %v1304_v53 }
 0x3ef   : > { %v1403_v18 = vadd.f32 %v1392_v24, %v1379_v62  ;;  %v1404_v25 = vadd.f32 %v1392_v24, %v1380_v28 }
 0x3f1   : > { %v1262_v22 = vpop.f32.mrf.mxu2 }
 0x3f2   : > { %v1291_v30 = vpop.f32.mrf.mxu3 }
 0x3f3   : > { %v1305_v47 = vpack.c.bf16 %v1291_v30, %v1262_v22  ;;  %v1401_v22 = vadd.f32 %v1391_v10, %v1377_v63 }
 0x3f5   : > { %v1381_v52 = vunpack.c.l.bf16 %v1305_v47  ;;  %v1382_v9 = vunpack.c.h.bf16 %v1305_v47  ;;  %v1415_v26 = vpack.c.bf16 %v1403_v18, %v1401_v22 }
 0x3f7   : > { %v1405_v56 = vadd.f32 %v1393_v51, %v1381_v52  ;;  %v1406_v0 = vadd.f32 %v1393_v51, %v1382_v9  ;;  %v1425_v27 = vunpack.c.l.bf16 %v1415_v26 }
 0x3f9   : > { %v1264_v36 = vpop.f32.mrf.mxu2 }
 0x3fa   : > { %v1293_v33 = vpop.f32.mrf.mxu3 }
 0x3fb   : > { %v1306_v46 = vpack.c.bf16 %v1293_v33, %v1264_v36  ;;  %v1389_v36 = vunpack.c.l.bf16 %v1316_v61 }
 0x3fd   : > { %v1383_v49 = vunpack.c.l.bf16 %v1306_v46  ;;  %v1384_v42 = vunpack.c.h.bf16 %v1306_v46  ;;  %v1399_v46 = vadd.f32 %v1390_v12, %v1375_v57  ;;  %v1397_v51 = vadd.f32 %v1389_v36, %v1373_v35 }
 0x3ff   : > { %v1407_v40 = vadd.f32 %v1394_v44, %v1383_v49  ;;  %v1408_v58 = vadd.f32 %v1394_v44, %v1384_v42  ;;  %v1416_v49 = vpack.c.bf16 %v1404_v25, %v1402_v38  ;;  %v1398_v42 = vadd.f32 %v1389_v36, %v1374_v37 }
 0x400   : > { %v1413_v43 = vpack.c.bf16 %v1399_v46, %v1397_v51 }
 0x401   : > { %v1267_v45 = vpop.f32.mrf.mxu2  ;;  %v1417_v1 = vpack.c.bf16 %v1407_v40, %v1405_v56  ;;  %v1418_v11 = vpack.c.bf16 %v1408_v58, %v1406_v0  ;;  %v1414_v15 = vpack.c.bf16 %v1400_v48, %v1398_v42  ;;  %v1426_v53 = vunpack.c.l.bf16 %v1416_v49  ;;  %v2041_v58 = vld [vmem:[%s2570_s7 + $0x8] sm:$0xff] }
 0x402   : > { %v1296_v50 = vpop.f32.mrf.mxu3  ;;  %v1427_v40 = vunpack.c.h.bf16 %v1415_v26  ;;  %v1421_v56 = vunpack.c.l.bf16 %v1413_v43  ;;  %1470 = vperm.xlu1 %1927, %v2041_v58  }
 0x403   : > { %v1307_v41 = vpack.c.bf16 %v1296_v50, %v1267_v45  ;;  %v1429_v16 = vunpack.c.l.bf16 %v1417_v1  ;;  %v1430_v30 = vunpack.c.l.bf16 %v1418_v11  ;;  %v1431_v52 = vunpack.c.h.bf16 %v1417_v1 }
 0x404   : > { %v1432_v23 = vunpack.c.h.bf16 %v1418_v11  ;;  %v1422_v61 = vunpack.c.l.bf16 %v1414_v15  ;;  %v1424_v0 = vunpack.c.h.bf16 %v1414_v15  ;;  %v2044_v11 = vld [vmem:[%s2570_s7 + $0x18] sm:$0xff] }
 0x405   : > { %v1385_v5 = vunpack.c.l.bf16 %v1307_v41  ;;  %v1386_v7 = vunpack.c.h.bf16 %v1307_v41  ;;  %2009 = vtanh.f32 %v1429_v16  ;;  %v1428_v41 = vunpack.c.h.bf16 %v1416_v49 }
 0x406   : > { %2011 = vtanh.f32 %v1430_v30 }
 0x407   : > { %v1409_v17 = vadd.f32 %v1395_v3, %v1385_v5  ;;  %v1410_v19 = vadd.f32 %v1395_v3, %v1386_v7 }
 0x409   : > { %v1269_v32 = vpop.f32.mrf.mxu2 }
 0x40a   : > { %v1298_v2 = vpop.f32.mrf.mxu3  ;;  %1478 = vperm.xlu1 %1927, %v2044_v11  }
 0x40b   : > { %v1308_v8 = vpack.c.bf16 %v1298_v2, %v1269_v32  ;;  %v2010_v9 = vpop.eup %2009  ;;  %v1423_v32 = vunpack.c.h.bf16 %v1413_v43 }
 0x40c   : > { %v2012_v6 = vpop.eup %2011 }
 0x40d   : > { %v1387_v4 = vunpack.c.l.bf16 %v1308_v8  ;;  %v1388_v13 = vunpack.c.h.bf16 %v1308_v8 }
 0x40f   : > { %v1411_v39 = vadd.f32 %v1396_v29, %v1387_v4  ;;  %v1412_v20 = vadd.f32 %v1396_v29, %v1388_v13 }
 0x411   : > { %v1419_v33 = vpack.c.bf16 %v1411_v39, %v1409_v17  ;;  %v1420_v31 = vpack.c.bf16 %v1412_v20, %v1410_v19  ;;  %v1853_v19 = vld [vmem:[%s2569_s6] sm:$0xff]  ;;  %v1854_v39 = vld [vmem:[%s2569_s6 + $0x8] sm:$0xff] }
 0x413   : > { %v1433_v47 = vunpack.c.l.bf16 %v1419_v33  ;;  %v1434_v45 = vunpack.c.l.bf16 %v1420_v31  ;;  %v1435_v44 = vunpack.c.h.bf16 %v1419_v33  ;;  %v1436_v50 = vunpack.c.h.bf16 %v1420_v31 }
 0x415   : > { %2013 = vtanh.f32 %v1433_v47 }
 0x416   : > { %2015 = vtanh.f32 %v1434_v45 }
 0x417   : > { %2017 = vtanh.f32 %v1435_v44 }
 0x418   : > { %2019 = vtanh.f32 %v1436_v50 }
 0x419   : > { %2021 = vtanh.f32 %v1431_v52 }
 0x41a   : > { %2023 = vtanh.f32 %v1432_v23 }
 0x41b   : > { %v2014_v55 = vpop.eup %2013  ;;  %2025 = vtanh.f32 %v1425_v27 }
 0x41c   : > { %v2016_v60 = vpop.eup %2015  ;;  %2027 = vtanh.f32 %v1426_v53 }
 0x41d   : > { %v2018_v24 = vpop.eup %2017  ;;  %2029 = vtanh.f32 %v1427_v40 }
 0x41e   : > { %v2020_v62 = vpop.eup %2019  ;;  %2031 = vtanh.f32 %v1428_v41  ;;  %v1459_v1 = vpack.c.bf16 %v2018_v24, %v2014_v55 }
 0x41f   : > { %v2022_v2 = vpop.eup %2021  ;;  %2033 = vtanh.f32 %v1421_v56  ;;  %v1460_v3 = vpack.c.bf16 %v2020_v62, %v2016_v60 }
 0x420   : > { %v2024_v5 = vpop.eup %2023  ;;  %2035 = vtanh.f32 %v1422_v61  ;;  %1501 = vmatpush.bf16.msra.mxu0 %v1459_v1  ;;  %v1457_v10 = vpack.c.bf16 %v2022_v2, %v2010_v9 }
 0x421   : > { %v2026_v7 = vpop.eup %2025  ;;  %2037 = vtanh.f32 %v1423_v32  ;;  %1520 = vmatpush.bf16.msra.mxu1 %v1460_v3  ;;  %v1458_v28 = vpack.c.bf16 %v2024_v5, %v2012_v6 }
 0x422   : > { %v2028_v8 = vpop.eup %2027  ;;  %2039 = vtanh.f32 %v1424_v0 }
 0x423   : > { %v2030_v63 = vpop.eup %2029 }
 0x424   : > { %v2032_v29 = vpop.eup %2031  ;;  %1502 = vmatpush.bf16.msra.mxu0 %v1457_v10  ;;  %v1455_v13 = vpack.c.bf16 %v2030_v63, %v2026_v7 }
 0x425   : > { %v2034_v12 = vpop.eup %2033  ;;  %1521 = vmatpush.bf16.msra.mxu1 %v1458_v28  ;;  %v1456_v14 = vpack.c.bf16 %v2032_v29, %v2028_v8 }
 0x426   : > { %v2036_v4 = vpop.eup %2035 }
 0x427   : > { %v2038_v57 = vpop.eup %2037 }
 0x428   : > { %v2040_v18 = vpop.eup %2039  ;;  %1503 = vmatpush.bf16.msra.mxu0 %v1455_v13  ;;  %v1453_v16 = vpack.c.bf16 %v2038_v57, %v2034_v12 }
 0x429   : > { %1522 = vmatpush.bf16.msra.mxu1 %v1456_v14  ;;  %v1454_v17 = vpack.c.bf16 %v2040_v18, %v2036_v4 }
 0x42c   : > { %1504 = vmatpush.bf16.msra.mxu0 %v1453_v16 }
 0x42d   : > { %1523 = vmatpush.bf16.msra.mxu1 %v1454_v17 }
 0x42f   : > { %1820 = vmatmul.msk.bf16.vlgmr.msra.gmra.mxu0 %vm722_vm1, %v1853_v19 }
 0x430   : > { %1822 = vmatmul.msk.bf16.vlgmr.msra.gmra.mxu1 %vm722_vm1, %v1853_v19 }
 0x43f   : > { %1821 = vmatmul.msk.bf16.gmra.mxu0 %vm722_vm1, %v1854_v39 }
 0x440   : > { %1823 = vmatmul.msk.bf16.gmra.mxu1 %vm722_vm1, %v1854_v39 }
 0x441   : > { %2072 = shalt.err (!%p2069_p5)
}
 0x442   : > { %s2148_s23 = smov 256   ;;  %s2149_s24 = smov 512   ;;  %v1467_v20 = vpop.permute.xlu0 %1466  ;;  %v1475_v38 = vpop.permute.xlu2 %1474 }
 0x443   : > { %s2150_s25 = smov 16   ;;  %s2580_s0 = sshll.u32 %s2258_s28, 6 }
 0x444   : > { %1857 = dma.vmem_to_hbm [thread:$0]  (%p2239_p6), %s1570_s16, 1024, %s1572_s26, %s1552_s27, %s2148_s23, %s2149_s24, %s2150_s25  }
 0x445   : > { %s389_s1 = scalar_lea.vmem [#allocation5], %s2580_s0  ;;  %s1585_s26 = scalar_lea.hbm %s2572_s9, %s2505_s22 }
 0x446   : > { %s1586_s27 = sshll.u32 %s389_s1, 4  ;;  %s1588_s29 = sshll.u32 %s1585_s26, 4  ;;  %s1587_s27 = int_to_ptr.vmem [resolvable:$true] %s1586_s27  ;;  %s1589_s29 = int_to_ptr.hbm [resolvable:$true] %s1588_s29 }
 0x447   : > { %s1557_s21 = scalar_lea.sflag [#allocation6], %s2258_s28  ;;  %s2087_s14 = sshra.s32 %s1589_s29, 4  ;;  %s2088_s14 = int_to_ptr.hbm [resolvable:$true] %s2087_s14 }
 0x448   : > { %s2089_s13 = scalar_lea.hbm %s2088_s14, 64  ;;  %s2093_s17 = scalar_lea.hbm %s2572_s9, 128 }
 0x449   : > { %p2090_p7 = scmp.ne.s32.totalorder %s2088_s14, %s2089_s13  ;;  %p2094_p12 = scmp.lt.s32.totalorder %s2088_s14, %s2572_s9 }
 0x44a   : > { %p2095_p13 = scmp.lt.s32.totalorder %s2093_s17, %s2089_s13 }
 0x44b   : > { %p2091_p10 = pnand %p2090_p7, %p2239_p6 }
 0x44c   : > { %p2096_p0 = por %p2095_p13, %p2094_p12 }
 0x44d   : > { %p2092_p11 = pneg %p2091_p10 }
 0x44f   : > { %p2097_p1 = pnand %p2096_p0, %p2092_p11 }
 0x474   : > { %v1471_v35 = vpop.permute.xlu1 %1470 }
 0x47c   : > { %v1479_v44 = vpop.permute.xlu1 %1478 }
 0x4ac   : > { %v1506_v21 = vpop.f32.mrf.mxu0 }
 0x4ad   : > { %v1525_v22 = vpop.f32.mrf.mxu1  ;;  %v1507_v25 = vadd.f32 %v1506_v21, %v1467_v20 }
 0x4ae   : > { %v1526_v30 = vadd.f32 %v1525_v22, %v1467_v20 }
 0x4af   : > { %1543 = vst [vmem:[%s389_s1] sm:$0xff] %v1507_v25 }
 0x4b0   : > { %1544 = vst [vmem:[%s389_s1 + $0x8] sm:$0xff] %v1526_v30 }
 0x4b4   : > { %v1508_v36 = vpop.f32.mrf.mxu0 }
 0x4b5   : > { %v1509_v33 = vadd.f32 %v1508_v36, %v1471_v35  ;;  %v1527_v31 = vpop.f32.mrf.mxu1 }
 0x4b6   : > { %v1528_v37 = vadd.f32 %v1527_v31, %v1471_v35 }
 0x4b7   : > { %1545 = vst [vmem:[%s389_s1 + $0x10] sm:$0xff] %v1509_v33 }
 0x4b8   : > { %1546 = vst [vmem:[%s389_s1 + $0x18] sm:$0xff] %v1528_v37 }
 0x4bc   : > { %v1511_v46 = vpop.f32.mrf.mxu0 }
 0x4bd   : > { %v1530_v26 = vpop.f32.mrf.mxu1  ;;  %v1512_v47 = vadd.f32 %v1511_v46, %v1475_v38 }
 0x4be   : > { %v1531_v45 = vadd.f32 %v1530_v26, %v1475_v38 }
 0x4bf   : > { %1547 = vst [vmem:[%s389_s1 + $0x20] sm:$0xff] %v1512_v47 }
 0x4c0   : > { %1548 = vst [vmem:[%s389_s1 + $0x28] sm:$0xff] %v1531_v45 }
 0x4c4   : > { %v1513_v48 = vpop.f32.mrf.mxu0 }
 0x4c5   : > { %v1514_v49 = vadd.f32 %v1513_v48, %v1479_v44  ;;  %v1532_v50 = vpop.f32.mrf.mxu1 }
 0x4c6   : > { %v1533_v51 = vadd.f32 %v1532_v50, %v1479_v44 }
 0x4c7   : > { %1549 = vst [vmem:[%s389_s1 + $0x30] sm:$0xff] %v1514_v49 }
 0x4c8   : > { %1550 = vst [vmem:[%s389_s1 + $0x38] sm:$0xff] %v1533_v51 }
 0x4c9   : > { %2100 = shalt.err (!%p2097_p1)
}
 0x4ca   : > { %1858 = dma.vmem_to_hbm [thread:$0]  (%p2239_p6), %s1587_s27, 1024, %s1589_s29, %s1557_s21, %s2148_s23, %s2149_s24, %s2150_s25  }
 0x4cb PF: > { %s1603_s28 = sand.u32 1, %s2127_s30   ;;  %p1862_p2 = pnand %p1692_p9, %p2243_p8 }
 0x4cc   : > { %s1604_s1 = scalar_lea.sflag [#allocation4], %s1603_s28 }
 0x4cd   : > { %p1863_p3 = pneg %p1862_p2 }
 0x4cf   : > { %2118 = dma.done.wait (%p1863_p3), %s1604_s1, 1024  }
 0x4d0   : > { %2120 = vsyncadd (%p1863_p3), %s1604_s1, 4294966272  ;;  %s1614_s14 = scalar_lea.sflag [#allocation6], %s1603_s28 }
 0x4d1   : > { %2122 = dma.done.wait (%p1863_p3), %s1614_s14, 1024  }
 0x4d2   : > { %2124 = vsyncadd (%p1863_p3), %s1614_s14, 4294966272  ;;  %p23_p6 = scmp.ge.s32.totalorder %s2224_s15, 4   ;;  %s2581_s30 = smov %s2131_s10 }
 0x4d3   : > { %s2582_s10 = smov %s2135_s11  ;;  %s2583_s11 = smov %s2237_s18 }
 0x4d4   : > { %s2584_s12 = smov %s2224_s15  ;;  %25 = sbr.rel (!%p23_p6) target bundleno = 8 (0x8), region = 147 }
 0x4d9   :  { %1620 = vsyncpa [#allocation4], 1 }
 0x4da   :  { %1622 = vsyncpa [#allocation4 + $0x1], 1 }
 0x4db   :  { %1623 = vsyncpa [#allocation6], 1 }
 0x4dc   :  { %1625 = vsyncpa [#allocation6 + $0x1], 1 }

</bundles_post_ra>
